<compile_context>
chip_gen: v5e
topology: v5e:2x2
jax: 0.10.0
libtpu: 0.0.40
codegen_flags: <defaults>
</compile_context>

<pallas_src>
import functools
import math

import jax
import jax.numpy as jnp
from jax.experimental import pallas as pl
from jax.experimental.pallas import tpu as pltpu


# ----------------------------------------------------------------------------
# Fused encoder-layer kernel
# ----------------------------------------------------------------------------

def _layernorm(y, gamma, beta, eps):
    mu = jnp.mean(y, axis=-1, keepdims=True)
    var = jnp.mean(jnp.square(y - mu), axis=-1, keepdims=True)
    return (y - mu) * jax.lax.rsqrt(var + eps) * gamma + beta


def _encoder_layer_kernel(x_ref, mask_ref,
                          wqkv_ref, wo_ref, w1_ref, w2_ref, vec_ref,
                          o_ref, *, n_head, eps):
    BB, S, D = x_ref.shape          # batch-block, seq, d_model
    H = n_head
    Dh = D // H
    F = w1_ref.shape[1]

    x = x_ref[...]                                    # [BB, S, D]
    mask = mask_ref[...]                              # [BB, 1, S] additive
    x2 = x.reshape(BB * S, D)                         # flatten for matmul width

    # Packed small vectors: one slab, one DMA.
    vec = vec_ref[...]                                # [8, W]
    bqkv = vec[0:1, :3 * D]
    b1 = vec[1:2, :F]
    bo = vec[2:3, :D]
    g1 = vec[3:4, :D]
    be1 = vec[4:5, :D]
    b2 = vec[5:6, :D]
    g2 = vec[6:7, :D]
    be2 = vec[7:8, :D]

    # --- Fused QKV projection: one full-width MXU matmul.
    # (1/sqrt(Dh) already folded into the Q columns of wqkv at init.)
    qkv = jnp.dot(x2, wqkv_ref[...],
                  preferred_element_type=jnp.float32) + bqkv     # [BB*S, 3D]

    # --- Per-head attention, batched over the batch dim.
    ctx_heads = []
    for h in range(H):      # H is small; unrolled at trace time.
        q = qkv[:, h * Dh:(h + 1) * Dh].reshape(BB, S, Dh)
        k = qkv[:, D + h * Dh:D + (h + 1) * Dh].reshape(BB, S, Dh)
        v = qkv[:, 2 * D + h * Dh:2 * D + (h + 1) * Dh].reshape(BB, S, Dh)

        s = jnp.einsum('bqd,bkd->bqk', q, k,
                       preferred_element_type=jnp.float32)       # [BB, S, S]
        s = s + mask
        s = s - jnp.max(s, axis=-1, keepdims=True)
        p = jnp.exp(s)
        p = p * pl.reciprocal(jnp.sum(p, axis=-1, keepdims=True), approx=True)

        ctx_heads.append(jnp.einsum('bqk,bkd->bqd', p, v,
                                    preferred_element_type=jnp.float32))

    ctx = jnp.concatenate(ctx_heads, axis=-1).reshape(BB * S, D)  # [BB*S, D]

    # --- Fused output projection + bias + residual, then LayerNorm1.
    y1 = jnp.dot(ctx, wo_ref[...],
                 preferred_element_type=jnp.float32) + bo + x2
    y1 = _layernorm(y1, g1, be1, eps)                 # Dropout1 -> identity

    # --- Feed-forward (fc1 + ReLU + fc2) with residual + LayerNorm2 fused.
    h1 = jnp.dot(y1, w1_ref[...], preferred_element_type=jnp.float32) + b1
    h1 = jnp.maximum(h1, 0.0)
    f = jnp.dot(h1, w2_ref[...], preferred_element_type=jnp.float32) + b2
    y2 = _layernorm(f + y1, g2, be2, eps)             # Dropout2 -> identity

    o_ref[...] = y2.reshape(BB, S, D)


def encoder_layer(x, addmask, lp, n_head, eps=1e-5, batch_block=None):
    B, S, D = x.shape
    F = lp["w1"].shape[1]
    bb = B if batch_block is None else batch_block
    nb = pl.cdiv(B, bb)

    kernel = functools.partial(_encoder_layer_kernel, n_head=n_head, eps=eps)

    return pl.pallas_call(
        kernel,
        out_shape=jax.ShapeDtypeStruct((B, S, D), jnp.float32),
        grid=(nb,),
        in_specs=[
            pl.BlockSpec((bb, S, D), lambda b: (b, 0, 0)),          # x
            pl.BlockSpec((bb, 1, S), lambda b: (b, 0, 0)),          # add-mask
            pl.BlockSpec((D, 3 * D), lambda b: (0, 0)),             # wqkv packed
            pl.BlockSpec((D, D), lambda b: (0, 0)),                 # wo
            pl.BlockSpec((D, F), lambda b: (0, 0)),                 # w1
            pl.BlockSpec((F, D), lambda b: (0, 0)),                 # w2
            pl.BlockSpec(lp["vec"].shape, lambda b: (0, 0)),        # packed vectors
        ],
        out_specs=pl.BlockSpec((bb, S, D), lambda b: (b, 0, 0)),
        compiler_params=pltpu.CompilerParams(
            dimension_semantics=("parallel",)),
    )(x, addmask, lp["wqkv"], lp["wo"], lp["w1"], lp["w2"], lp["vec"])


# ----------------------------------------------------------------------------
# Parameter init (deterministic, synthetic weights)
# ----------------------------------------------------------------------------

def _init_w(key, d_in, d_out):
    return jax.random.normal(key, (d_in, d_out), jnp.float32) * (1.0 / math.sqrt(d_in))


def init_encoder_params(key, vocab, d_model, n_head, ffn_hidden, n_layer):
    Dh = d_model // n_head
    scale = 1.0 / math.sqrt(Dh)
    keys = jax.random.split(key, 1 + 6 * n_layer)
    params = {
        "embed": jax.random.normal(keys[0], (vocab, d_model), jnp.float32) * 0.02,
        "layers": [],
    }

    W = max(3 * d_model, ffn_hidden, d_model)

    idx = 1
    for _ in range(n_layer):
        wq = _init_w(keys[idx + 0], d_model, d_model)
        wk = _init_w(keys[idx + 1], d_model, d_model)
        wv = _init_w(keys[idx + 2], d_model, d_model)
        wo = _init_w(keys[idx + 3], d_model, d_model)
        w1 = _init_w(keys[idx + 4], d_model, ffn_hidden)
        w2 = _init_w(keys[idx + 5], ffn_hidden, d_model)

        # Biases / LN params (synthetic: zero biases, unit gammas), packed into
        # a single [8, W] slab:
        #   row 0: bqkv (3D)  row 1: b1 (F)   row 2: bo   row 3: ln1_g
        #   row 4: ln1_b      row 5: b2       row 6: ln2_g row 7: ln2_b
        vec = jnp.zeros((8, W), jnp.float32)
        vec = vec.at[3, :d_model].set(1.0)   # ln1 gamma
        vec = vec.at[6, :d_model].set(1.0)   # ln2 gamma

        lp = {
            # Fused QKV weights [D, 3D]; 1/sqrt(Dh) folded into the Q columns.
            "wqkv": jnp.concatenate([wq * scale, wk, wv], axis=1),
            "wo": wo,
            "w1": w1,
            "w2": w2,
            "vec": vec,
        }
        params["layers"].append(lp)
        idx += 6
    return params


def sinusoidal_pe(seq_len, d_model):
    pos = jnp.arange(seq_len, dtype=jnp.float32)[:, None]
    i = jnp.arange(0, d_model, 2, dtype=jnp.float32)[None, :]
    angle = pos / jnp.power(10000.0, i / d_model)
    pe = jnp.zeros((seq_len, d_model), jnp.float32)
    pe = pe.at[:, 0::2].set(jnp.sin(angle))
    pe = pe.at[:, 1::2].set(jnp.cos(angle))
    return pe


# ----------------------------------------------------------------------------
# Encoder forward (embedding/mask glue in JAX, one fused Pallas kernel / layer)
# ----------------------------------------------------------------------------

def encoder_forward(params, ids, n_head):
    B, S = ids.shape
    D = params["embed"].shape[1]

    # TransformerEmbedding: token embedding + sinusoidal positional encoding.
    x = params["embed"][ids] + sinusoidal_pe(S, D)[None, :, :]     # [B, S, D]

    # Pad mask: token id 0 is padding -> large negative additive mask over keys.
    pad_keep = (ids != 0).astype(jnp.float32)                      # [B, S]
    addmask = (1.0 - pad_keep)[:, None, :] * (-1e9)                # [B, 1, S]

    for lp in params["layers"]:
        x = encoder_layer(x, addmask, lp, n_head)
    return x


# ----------------------------------------------------------------------------
# Main
# ----------------------------------------------------------------------------

if __name__ == "__main__":
    vocab, seq_len, d_model, n_head, ffn_hidden, n_layer = 50, 8, 32, 4, 64, 2
    batch = 2

    key = jax.random.PRNGKey(0)
    k_param, k_ids = jax.random.split(key)

    params = init_encoder_params(k_param, vocab, d_model, n_head,
                                 ffn_hidden, n_layer)

    ids = jax.random.randint(k_ids, (batch, seq_len), 1, vocab, dtype=jnp.int32)
    ids = ids.at[1, -2:].set(0)   # add some padding tokens in the second example

    fwd = jax.jit(functools.partial(encoder_forward, n_head=n_head))
    out = fwd(params, ids)
    out = jax.block_until_ready(out)

    assert out.shape == (batch, seq_len, d_model)
    assert jnp.all(jnp.isfinite(out))
    print("KERNEL_OK")
</pallas_src>

<mosaic_0001>
module attributes {stable_mosaic.version = 11 : i64} {
  func.func @_encoder_layer_kernel(%arg0: i32, %arg1: memref<2x8x32xf32, #tpu.memory_space<vmem>>, %arg2: memref<2x1x8xf32, #tpu.memory_space<vmem>>, %arg3: memref<32x96xf32, #tpu.memory_space<vmem>>, %arg4: memref<32x32xf32, #tpu.memory_space<vmem>>, %arg5: memref<32x64xf32, #tpu.memory_space<vmem>>, %arg6: memref<64x32xf32, #tpu.memory_space<vmem>>, %arg7: memref<8x96xf32, #tpu.memory_space<vmem>>, %arg8: memref<2x8x32xf32, #tpu.memory_space<vmem>>) attributes {dimension_semantics = [#tpu.dimension_semantics<parallel>], iteration_bounds = array<i64: 1>, scalar_prefetch = 0 : i64, scratch_operands = 0 : i64, tpu.core_type = #tpu.core_type<tc>, window_params = [{transform_indices = @transform_0, window_bounds = array<i64: 2, 8, 32>}, {transform_indices = @transform_1, window_bounds = array<i64: 2, 1, 8>}, {pipeline_mode = #tpu.pipeline_mode<synchronous>, transform_indices = @transform_2, window_bounds = array<i64: 32, 96>}, {pipeline_mode = #tpu.pipeline_mode<synchronous>, transform_indices = @transform_3, window_bounds = array<i64: 32, 32>}, {pipeline_mode = #tpu.pipeline_mode<synchronous>, transform_indices = @transform_4, window_bounds = array<i64: 32, 64>}, {pipeline_mode = #tpu.pipeline_mode<synchronous>, transform_indices = @transform_5, window_bounds = array<i64: 64, 32>}, {pipeline_mode = #tpu.pipeline_mode<synchronous>, transform_indices = @transform_6, window_bounds = array<i64: 8, 96>}, {transform_indices = @transform_7, window_bounds = array<i64: 2, 8, 32>}]} {
    %c0 = arith.constant 0 : index
    %c0_0 = arith.constant 0 : index
    %c0_1 = arith.constant 0 : index
    %0 = vector.load %arg1[%c0, %c0_0, %c0_1] : memref<2x8x32xf32, #tpu.memory_space<vmem>>, vector<2x8x32xf32>
    %c0_2 = arith.constant 0 : index
    %c0_3 = arith.constant 0 : index
    %c0_4 = arith.constant 0 : index
    %1 = vector.load %arg2[%c0_2, %c0_3, %c0_4] : memref<2x1x8xf32, #tpu.memory_space<vmem>>, vector<2x1x8xf32>
    %2 = vector.shape_cast %0 : vector<2x8x32xf32> to vector<16x32xf32>
    %c0_5 = arith.constant 0 : index
    %c0_6 = arith.constant 0 : index
    %3 = vector.load %arg7[%c0_5, %c0_6] : memref<8x96xf32, #tpu.memory_space<vmem>>, vector<8x96xf32>
    %4 = vector.extract_strided_slice %3 {offsets = [0, 0], sizes = [1, 96], strides = [1, 1]} : vector<8x96xf32> to vector<1x96xf32>
    %5 = vector.extract_strided_slice %3 {offsets = [1, 0], sizes = [1, 64], strides = [1, 1]} : vector<8x96xf32> to vector<1x64xf32>
    %6 = vector.extract_strided_slice %3 {offsets = [2, 0], sizes = [1, 32], strides = [1, 1]} : vector<8x96xf32> to vector<1x32xf32>
    %7 = vector.extract_strided_slice %3 {offsets = [3, 0], sizes = [1, 32], strides = [1, 1]} : vector<8x96xf32> to vector<1x32xf32>
    %8 = vector.extract_strided_slice %3 {offsets = [4, 0], sizes = [1, 32], strides = [1, 1]} : vector<8x96xf32> to vector<1x32xf32>
    %9 = vector.extract_strided_slice %3 {offsets = [5, 0], sizes = [1, 32], strides = [1, 1]} : vector<8x96xf32> to vector<1x32xf32>
    %10 = vector.extract_strided_slice %3 {offsets = [6, 0], sizes = [1, 32], strides = [1, 1]} : vector<8x96xf32> to vector<1x32xf32>
    %11 = vector.extract_strided_slice %3 {offsets = [7, 0], sizes = [1, 32], strides = [1, 1]} : vector<8x96xf32> to vector<1x32xf32>
    %c0_7 = arith.constant 0 : index
    %c0_8 = arith.constant 0 : index
    %12 = vector.load %arg3[%c0_7, %c0_8] : memref<32x96xf32, #tpu.memory_space<vmem>>, vector<32x96xf32>
    %cst = arith.constant dense<0.000000e+00> : vector<16x96xf32>
    %13 = tpu.matmul %2, %12, %cst {dimension_numbers = #tpu.dot_dimension_numbers<[1], [0], [0], [1], [0, 0, 1, 1], [], []>} : vector<16x32xf32>, vector<32x96xf32>, vector<16x96xf32> -> vector<16x96xf32>
    %14 = vector.broadcast %4 : vector<1x96xf32> to vector<16x96xf32>
    %15 = arith.addf %13, %14 : vector<16x96xf32>
    %16 = vector.extract_strided_slice %15 {offsets = [0, 0], sizes = [16, 8], strides = [1, 1]} : vector<16x96xf32> to vector<16x8xf32>
    %17 = vector.shape_cast %16 : vector<16x8xf32> to vector<2x8x8xf32>
    %18 = vector.extract_strided_slice %15 {offsets = [0, 32], sizes = [16, 8], strides = [1, 1]} : vector<16x96xf32> to vector<16x8xf32>
    %19 = vector.shape_cast %18 : vector<16x8xf32> to vector<2x8x8xf32>
    %20 = vector.extract_strided_slice %15 {offsets = [0, 64], sizes = [16, 8], strides = [1, 1]} : vector<16x96xf32> to vector<16x8xf32>
    %21 = vector.shape_cast %20 : vector<16x8xf32> to vector<2x8x8xf32>
    "tpu.trace_start"() <{level = 10 : i32, message = "bqd,bkd->bqk"}> : () -> ()
    %cst_9 = arith.constant dense<0.000000e+00> : vector<2x8x8xf32>
    %22 = tpu.matmul %17, %19, %cst_9 {dimension_numbers = #tpu.dot_dimension_numbers<[2], [2], [1], [1], [0, 0, 0, 1, 1, 1], [0], [0]>} : vector<2x8x8xf32>, vector<2x8x8xf32>, vector<2x8x8xf32> -> vector<2x8x8xf32>
    "tpu.trace_stop"() : () -> ()
    %23 = vector.broadcast %1 : vector<2x1x8xf32> to vector<2x8x8xf32>
    %24 = arith.addf %22, %23 : vector<2x8x8xf32>
    %cst_10 = arith.constant dense<0xFF800000> : vector<2x8xf32>
    %25 = vector.multi_reduction <maximumf>, %24, %cst_10 [2] : vector<2x8x8xf32> to vector<2x8xf32>
    %26 = vector.shape_cast %25 : vector<2x8xf32> to vector<2x8x1xf32>
    %27 = vector.broadcast %26 : vector<2x8x1xf32> to vector<2x8x8xf32>
    %28 = arith.subf %24, %27 : vector<2x8x8xf32>
    %29 = math.exp %28 : vector<2x8x8xf32>
    %cst_11 = arith.constant dense<0.000000e+00> : vector<2x8xf32>
    %30 = vector.multi_reduction <add>, %29, %cst_11 [2] : vector<2x8x8xf32> to vector<2x8xf32>
    %31 = vector.shape_cast %30 : vector<2x8xf32> to vector<2x8x1xf32>
    %32 = tpu.reciprocal %31 {approx = true} : vector<2x8x1xf32> -> vector<2x8x1xf32>
    %33 = vector.broadcast %32 : vector<2x8x1xf32> to vector<2x8x8xf32>
    %34 = arith.mulf %29, %33 : vector<2x8x8xf32>
    "tpu.trace_start"() <{level = 10 : i32, message = "bqk,bkd->bqd"}> : () -> ()
    %cst_12 = arith.constant dense<0.000000e+00> : vector<2x8x8xf32>
    %35 = tpu.matmul %34, %21, %cst_12 {dimension_numbers = #tpu.dot_dimension_numbers<[2], [1], [1], [2], [0, 0, 0, 1, 1, 2], [0], [0]>} : vector<2x8x8xf32>, vector<2x8x8xf32>, vector<2x8x8xf32> -> vector<2x8x8xf32>
    "tpu.trace_stop"() : () -> ()
    %36 = vector.extract_strided_slice %15 {offsets = [0, 8], sizes = [16, 8], strides = [1, 1]} : vector<16x96xf32> to vector<16x8xf32>
    %37 = vector.shape_cast %36 : vector<16x8xf32> to vector<2x8x8xf32>
    %38 = vector.extract_strided_slice %15 {offsets = [0, 40], sizes = [16, 8], strides = [1, 1]} : vector<16x96xf32> to vector<16x8xf32>
    %39 = vector.shape_cast %38 : vector<16x8xf32> to vector<2x8x8xf32>
    %40 = vector.extract_strided_slice %15 {offsets = [0, 72], sizes = [16, 8], strides = [1, 1]} : vector<16x96xf32> to vector<16x8xf32>
    %41 = vector.shape_cast %40 : vector<16x8xf32> to vector<2x8x8xf32>
    "tpu.trace_start"() <{level = 10 : i32, message = "bqd,bkd->bqk"}> : () -> ()
    %cst_13 = arith.constant dense<0.000000e+00> : vector<2x8x8xf32>
    %42 = tpu.matmul %37, %39, %cst_13 {dimension_numbers = #tpu.dot_dimension_numbers<[2], [2], [1], [1], [0, 0, 0, 1, 1, 1], [0], [0]>} : vector<2x8x8xf32>, vector<2x8x8xf32>, vector<2x8x8xf32> -> vector<2x8x8xf32>
    "tpu.trace_stop"() : () -> ()
    %43 = vector.broadcast %1 : vector<2x1x8xf32> to vector<2x8x8xf32>
    %44 = arith.addf %42, %43 : vector<2x8x8xf32>
    %cst_14 = arith.constant dense<0xFF800000> : vector<2x8xf32>
    %45 = vector.multi_reduction <maximumf>, %44, %cst_14 [2] : vector<2x8x8xf32> to vector<2x8xf32>
    %46 = vector.shape_cast %45 : vector<2x8xf32> to vector<2x8x1xf32>
    %47 = vector.broadcast %46 : vector<2x8x1xf32> to vector<2x8x8xf32>
    %48 = arith.subf %44, %47 : vector<2x8x8xf32>
    %49 = math.exp %48 : vector<2x8x8xf32>
    %cst_15 = arith.constant dense<0.000000e+00> : vector<2x8xf32>
    %50 = vector.multi_reduction <add>, %49, %cst_15 [2] : vector<2x8x8xf32> to vector<2x8xf32>
    %51 = vector.shape_cast %50 : vector<2x8xf32> to vector<2x8x1xf32>
    %52 = tpu.reciprocal %51 {approx = true} : vector<2x8x1xf32> -> vector<2x8x1xf32>
    %53 = vector.broadcast %52 : vector<2x8x1xf32> to vector<2x8x8xf32>
    %54 = arith.mulf %49, %53 : vector<2x8x8xf32>
    "tpu.trace_start"() <{level = 10 : i32, message = "bqk,bkd->bqd"}> : () -> ()
    %cst_16 = arith.constant dense<0.000000e+00> : vector<2x8x8xf32>
    %55 = tpu.matmul %54, %41, %cst_16 {dimension_numbers = #tpu.dot_dimension_numbers<[2], [1], [1], [2], [0, 0, 0, 1, 1, 2], [0], [0]>} : vector<2x8x8xf32>, vector<2x8x8xf32>, vector<2x8x8xf32> -> vector<2x8x8xf32>
    "tpu.trace_stop"() : () -> ()
    %56 = vector.extract_strided_slice %15 {offsets = [0, 16], sizes = [16, 8], strides = [1, 1]} : vector<16x96xf32> to vector<16x8xf32>
    %57 = vector.shape_cast %56 : vector<16x8xf32> to vector<2x8x8xf32>
    %58 = vector.extract_strided_slice %15 {offsets = [0, 48], sizes = [16, 8], strides = [1, 1]} : vector<16x96xf32> to vector<16x8xf32>
    %59 = vector.shape_cast %58 : vector<16x8xf32> to vector<2x8x8xf32>
    %60 = vector.extract_strided_slice %15 {offsets = [0, 80], sizes = [16, 8], strides = [1, 1]} : vector<16x96xf32> to vector<16x8xf32>
    %61 = vector.shape_cast %60 : vector<16x8xf32> to vector<2x8x8xf32>
    "tpu.trace_start"() <{level = 10 : i32, message = "bqd,bkd->bqk"}> : () -> ()
    %cst_17 = arith.constant dense<0.000000e+00> : vector<2x8x8xf32>
    %62 = tpu.matmul %57, %59, %cst_17 {dimension_numbers = #tpu.dot_dimension_numbers<[2], [2], [1], [1], [0, 0, 0, 1, 1, 1], [0], [0]>} : vector<2x8x8xf32>, vector<2x8x8xf32>, vector<2x8x8xf32> -> vector<2x8x8xf32>
    "tpu.trace_stop"() : () -> ()
    %63 = vector.broadcast %1 : vector<2x1x8xf32> to vector<2x8x8xf32>
    %64 = arith.addf %62, %63 : vector<2x8x8xf32>
    %cst_18 = arith.constant dense<0xFF800000> : vector<2x8xf32>
    %65 = vector.multi_reduction <maximumf>, %64, %cst_18 [2] : vector<2x8x8xf32> to vector<2x8xf32>
    %66 = vector.shape_cast %65 : vector<2x8xf32> to vector<2x8x1xf32>
    %67 = vector.broadcast %66 : vector<2x8x1xf32> to vector<2x8x8xf32>
    %68 = arith.subf %64, %67 : vector<2x8x8xf32>
    %69 = math.exp %68 : vector<2x8x8xf32>
    %cst_19 = arith.constant dense<0.000000e+00> : vector<2x8xf32>
    %70 = vector.multi_reduction <add>, %69, %cst_19 [2] : vector<2x8x8xf32> to vector<2x8xf32>
    %71 = vector.shape_cast %70 : vector<2x8xf32> to vector<2x8x1xf32>
    %72 = tpu.reciprocal %71 {approx = true} : vector<2x8x1xf32> -> vector<2x8x1xf32>
    %73 = vector.broadcast %72 : vector<2x8x1xf32> to vector<2x8x8xf32>
    %74 = arith.mulf %69, %73 : vector<2x8x8xf32>
    "tpu.trace_start"() <{level = 10 : i32, message = "bqk,bkd->bqd"}> : () -> ()
    %cst_20 = arith.constant dense<0.000000e+00> : vector<2x8x8xf32>
    %75 = tpu.matmul %74, %61, %cst_20 {dimension_numbers = #tpu.dot_dimension_numbers<[2], [1], [1], [2], [0, 0, 0, 1, 1, 2], [0], [0]>} : vector<2x8x8xf32>, vector<2x8x8xf32>, vector<2x8x8xf32> -> vector<2x8x8xf32>
    "tpu.trace_stop"() : () -> ()
    %76 = vector.extract_strided_slice %15 {offsets = [0, 24], sizes = [16, 8], strides = [1, 1]} : vector<16x96xf32> to vector<16x8xf32>
    %77 = vector.shape_cast %76 : vector<16x8xf32> to vector<2x8x8xf32>
    %78 = vector.extract_strided_slice %15 {offsets = [0, 56], sizes = [16, 8], strides = [1, 1]} : vector<16x96xf32> to vector<16x8xf32>
    %79 = vector.shape_cast %78 : vector<16x8xf32> to vector<2x8x8xf32>
    %80 = vector.extract_strided_slice %15 {offsets = [0, 88], sizes = [16, 8], strides = [1, 1]} : vector<16x96xf32> to vector<16x8xf32>
    %81 = vector.shape_cast %80 : vector<16x8xf32> to vector<2x8x8xf32>
    "tpu.trace_start"() <{level = 10 : i32, message = "bqd,bkd->bqk"}> : () -> ()
    %cst_21 = arith.constant dense<0.000000e+00> : vector<2x8x8xf32>
    %82 = tpu.matmul %77, %79, %cst_21 {dimension_numbers = #tpu.dot_dimension_numbers<[2], [2], [1], [1], [0, 0, 0, 1, 1, 1], [0], [0]>} : vector<2x8x8xf32>, vector<2x8x8xf32>, vector<2x8x8xf32> -> vector<2x8x8xf32>
    "tpu.trace_stop"() : () -> ()
    %83 = vector.broadcast %1 : vector<2x1x8xf32> to vector<2x8x8xf32>
    %84 = arith.addf %82, %83 : vector<2x8x8xf32>
    %cst_22 = arith.constant dense<0xFF800000> : vector<2x8xf32>
    %85 = vector.multi_reduction <maximumf>, %84, %cst_22 [2] : vector<2x8x8xf32> to vector<2x8xf32>
    %86 = vector.shape_cast %85 : vector<2x8xf32> to vector<2x8x1xf32>
    %87 = vector.broadcast %86 : vector<2x8x1xf32> to vector<2x8x8xf32>
    %88 = arith.subf %84, %87 : vector<2x8x8xf32>
    %89 = math.exp %88 : vector<2x8x8xf32>
    %cst_23 = arith.constant dense<0.000000e+00> : vector<2x8xf32>
    %90 = vector.multi_reduction <add>, %89, %cst_23 [2] : vector<2x8x8xf32> to vector<2x8xf32>
    %91 = vector.shape_cast %90 : vector<2x8xf32> to vector<2x8x1xf32>
    %92 = tpu.reciprocal %91 {approx = true} : vector<2x8x1xf32> -> vector<2x8x1xf32>
    %93 = vector.broadcast %92 : vector<2x8x1xf32> to vector<2x8x8xf32>
    %94 = arith.mulf %89, %93 : vector<2x8x8xf32>
    "tpu.trace_start"() <{level = 10 : i32, message = "bqk,bkd->bqd"}> : () -> ()
    %cst_24 = arith.constant dense<0.000000e+00> : vector<2x8x8xf32>
    %95 = tpu.matmul %94, %81, %cst_24 {dimension_numbers = #tpu.dot_dimension_numbers<[2], [1], [1], [2], [0, 0, 0, 1, 1, 2], [0], [0]>} : vector<2x8x8xf32>, vector<2x8x8xf32>, vector<2x8x8xf32> -> vector<2x8x8xf32>
    "tpu.trace_stop"() : () -> ()
    %96 = tpu.concatenate %35, %55, %75, %95 in 2 : vector<2x8x8xf32>, vector<2x8x8xf32>, vector<2x8x8xf32>, vector<2x8x8xf32> -> vector<2x8x32xf32>
    %97 = vector.shape_cast %96 : vector<2x8x32xf32> to vector<16x32xf32>
    %c0_25 = arith.constant 0 : index
    %c0_26 = arith.constant 0 : index
    %98 = vector.load %arg4[%c0_25, %c0_26] : memref<32x32xf32, #tpu.memory_space<vmem>>, vector<32x32xf32>
    %cst_27 = arith.constant dense<0.000000e+00> : vector<16x32xf32>
    %99 = tpu.matmul %97, %98, %cst_27 {dimension_numbers = #tpu.dot_dimension_numbers<[1], [0], [0], [1], [0, 0, 1, 1], [], []>} : vector<16x32xf32>, vector<32x32xf32>, vector<16x32xf32> -> vector<16x32xf32>
    %100 = vector.broadcast %6 : vector<1x32xf32> to vector<16x32xf32>
    %101 = arith.addf %99, %100 : vector<16x32xf32>
    %102 = arith.addf %101, %2 : vector<16x32xf32>
    %cst_28 = arith.constant dense<0.000000e+00> : vector<16xf32>
    %103 = vector.multi_reduction <add>, %102, %cst_28 [1] : vector<16x32xf32> to vector<16xf32>
    %104 = vector.shape_cast %103 : vector<16xf32> to vector<16x1xf32>
    %cst_29 = arith.constant 3.200000e+01 : f32
    %105 = vector.broadcast %cst_29 : f32 to vector<16x1xf32>
    %106 = arith.divf %104, %105 : vector<16x1xf32>
    %107 = vector.broadcast %106 : vector<16x1xf32> to vector<16x32xf32>
    %108 = arith.subf %102, %107 : vector<16x32xf32>
    %109 = arith.mulf %108, %108 : vector<16x32xf32>
    %cst_30 = arith.constant dense<0.000000e+00> : vector<16xf32>
    %110 = vector.multi_reduction <add>, %109, %cst_30 [1] : vector<16x32xf32> to vector<16xf32>
    %111 = vector.shape_cast %110 : vector<16xf32> to vector<16x1xf32>
    %cst_31 = arith.constant 3.200000e+01 : f32
    %112 = vector.broadcast %cst_31 : f32 to vector<16x1xf32>
    %113 = arith.divf %111, %112 : vector<16x1xf32>
    %114 = vector.broadcast %106 : vector<16x1xf32> to vector<16x32xf32>
    %115 = arith.subf %102, %114 : vector<16x32xf32>
    %cst_32 = arith.constant 9.99999974E-6 : f32
    %116 = vector.broadcast %cst_32 : f32 to vector<16x1xf32>
    %117 = arith.addf %113, %116 : vector<16x1xf32>
    %118 = math.rsqrt %117 : vector<16x1xf32>
    %119 = vector.broadcast %118 : vector<16x1xf32> to vector<16x32xf32>
    %120 = arith.mulf %115, %119 : vector<16x32xf32>
    %121 = vector.broadcast %7 : vector<1x32xf32> to vector<16x32xf32>
    %122 = arith.mulf %120, %121 : vector<16x32xf32>
    %123 = vector.broadcast %8 : vector<1x32xf32> to vector<16x32xf32>
    %124 = arith.addf %122, %123 : vector<16x32xf32>
    %c0_33 = arith.constant 0 : index
    %c0_34 = arith.constant 0 : index
    %125 = vector.load %arg5[%c0_33, %c0_34] : memref<32x64xf32, #tpu.memory_space<vmem>>, vector<32x64xf32>
    %cst_35 = arith.constant dense<0.000000e+00> : vector<16x64xf32>
    %126 = tpu.matmul %124, %125, %cst_35 {dimension_numbers = #tpu.dot_dimension_numbers<[1], [0], [0], [1], [0, 0, 1, 1], [], []>} : vector<16x32xf32>, vector<32x64xf32>, vector<16x64xf32> -> vector<16x64xf32>
    %127 = vector.broadcast %5 : vector<1x64xf32> to vector<16x64xf32>
    %128 = arith.addf %126, %127 : vector<16x64xf32>
    %cst_36 = arith.constant 0.000000e+00 : f32
    %129 = vector.broadcast %cst_36 : f32 to vector<16x64xf32>
    %130 = arith.maximumf %128, %129 : vector<16x64xf32>
    %c0_37 = arith.constant 0 : index
    %c0_38 = arith.constant 0 : index
    %131 = vector.load %arg6[%c0_37, %c0_38] : memref<64x32xf32, #tpu.memory_space<vmem>>, vector<64x32xf32>
    %cst_39 = arith.constant dense<0.000000e+00> : vector<16x32xf32>
    %132 = tpu.matmul %130, %131, %cst_39 {dimension_numbers = #tpu.dot_dimension_numbers<[1], [0], [0], [1], [0, 0, 1, 1], [], []>} : vector<16x64xf32>, vector<64x32xf32>, vector<16x32xf32> -> vector<16x32xf32>
    %133 = vector.broadcast %9 : vector<1x32xf32> to vector<16x32xf32>
    %134 = arith.addf %132, %133 : vector<16x32xf32>
    %135 = arith.addf %134, %124 : vector<16x32xf32>
    %cst_40 = arith.constant dense<0.000000e+00> : vector<16xf32>
    %136 = vector.multi_reduction <add>, %135, %cst_40 [1] : vector<16x32xf32> to vector<16xf32>
    %137 = vector.shape_cast %136 : vector<16xf32> to vector<16x1xf32>
    %cst_41 = arith.constant 3.200000e+01 : f32
    %138 = vector.broadcast %cst_41 : f32 to vector<16x1xf32>
    %139 = arith.divf %137, %138 : vector<16x1xf32>
    %140 = vector.broadcast %139 : vector<16x1xf32> to vector<16x32xf32>
    %141 = arith.subf %135, %140 : vector<16x32xf32>
    %142 = arith.mulf %141, %141 : vector<16x32xf32>
    %cst_42 = arith.constant dense<0.000000e+00> : vector<16xf32>
    %143 = vector.multi_reduction <add>, %142, %cst_42 [1] : vector<16x32xf32> to vector<16xf32>
    %144 = vector.shape_cast %143 : vector<16xf32> to vector<16x1xf32>
    %cst_43 = arith.constant 3.200000e+01 : f32
    %145 = vector.broadcast %cst_43 : f32 to vector<16x1xf32>
    %146 = arith.divf %144, %145 : vector<16x1xf32>
    %147 = vector.broadcast %139 : vector<16x1xf32> to vector<16x32xf32>
    %148 = arith.subf %135, %147 : vector<16x32xf32>
    %cst_44 = arith.constant 9.99999974E-6 : f32
    %149 = vector.broadcast %cst_44 : f32 to vector<16x1xf32>
    %150 = arith.addf %146, %149 : vector<16x1xf32>
    %151 = math.rsqrt %150 : vector<16x1xf32>
    %152 = vector.broadcast %151 : vector<16x1xf32> to vector<16x32xf32>
    %153 = arith.mulf %148, %152 : vector<16x32xf32>
    %154 = vector.broadcast %10 : vector<1x32xf32> to vector<16x32xf32>
    %155 = arith.mulf %153, %154 : vector<16x32xf32>
    %156 = vector.broadcast %11 : vector<1x32xf32> to vector<16x32xf32>
    %157 = arith.addf %155, %156 : vector<16x32xf32>
    %158 = vector.shape_cast %157 : vector<16x32xf32> to vector<2x8x32xf32>
    %c0_45 = arith.constant 0 : index
    %c0_46 = arith.constant 0 : index
    %c0_47 = arith.constant 0 : index
    %159 = vector.load %arg8[%c0_45, %c0_46, %c0_47] : memref<2x8x32xf32, #tpu.memory_space<vmem>>, vector<2x8x32xf32>
    tpu.vector_store %arg8[%c0_45, %c0_46, %c0_47], %158 {strides = array<i32>} : memref<2x8x32xf32, #tpu.memory_space<vmem>>, vector<2x8x32xf32>,
    return
  }
  func.func @transform_0(%arg0: i32) -> (i32, i32, i32) {
    %c0_i32 = arith.constant 0 : i32
    %c0_i32_0 = arith.constant 0 : i32
    %c0_i32_1 = arith.constant 0 : i32
    return %arg0, %c0_i32, %c0_i32_0 : i32, i32, i32
  }
  func.func @transform_1(%arg0: i32) -> (i32, i32, i32) {
    %c0_i32 = arith.constant 0 : i32
    %c0_i32_0 = arith.constant 0 : i32
    %c0_i32_1 = arith.constant 0 : i32
    return %arg0, %c0_i32, %c0_i32_0 : i32, i32, i32
  }
  func.func @transform_2(%arg0: i32) -> (i32, i32) {
    %c0_i32 = arith.constant 0 : i32
    %c0_i32_0 = arith.constant 0 : i32
    %c0_i32_1 = arith.constant 0 : i32
    return %c0_i32, %c0_i32_0 : i32, i32
  }
  func.func @transform_3(%arg0: i32) -> (i32, i32) {
    %c0_i32 = arith.constant 0 : i32
    %c0_i32_0 = arith.constant 0 : i32
    %c0_i32_1 = arith.constant 0 : i32
    return %c0_i32, %c0_i32_0 : i32, i32
  }
  func.func @transform_4(%arg0: i32) -> (i32, i32) {
    %c0_i32 = arith.constant 0 : i32
    %c0_i32_0 = arith.constant 0 : i32
    %c0_i32_1 = arith.constant 0 : i32
    return %c0_i32, %c0_i32_0 : i32, i32
  }
  func.func @transform_5(%arg0: i32) -> (i32, i32) {
    %c0_i32 = arith.constant 0 : i32
    %c0_i32_0 = arith.constant 0 : i32
    %c0_i32_1 = arith.constant 0 : i32
    return %c0_i32, %c0_i32_0 : i32, i32
  }
  func.func @transform_6(%arg0: i32) -> (i32, i32) {
    %c0_i32 = arith.constant 0 : i32
    %c0_i32_0 = arith.constant 0 : i32
    %c0_i32_1 = arith.constant 0 : i32
    return %c0_i32, %c0_i32_0 : i32, i32
  }
  func.func @transform_7(%arg0: i32) -> (i32, i32, i32) {
    %c0_i32 = arith.constant 0 : i32
    %c0_i32_0 = arith.constant 0 : i32
    %c0_i32_1 = arith.constant 0 : i32
    return %arg0, %c0_i32, %c0_i32_0 : i32, i32, i32
  }
}

module attributes {stable_mosaic.version = 11 : i64} {
  func.func @_encoder_layer_kernel(%arg0: i32, %arg1: memref<2x8x32xf32, #tpu.memory_space<vmem>>, %arg2: memref<2x1x8xf32, #tpu.memory_space<vmem>>, %arg3: memref<32x96xf32, #tpu.memory_space<vmem>>, %arg4: memref<32x32xf32, #tpu.memory_space<vmem>>, %arg5: memref<32x64xf32, #tpu.memory_space<vmem>>, %arg6: memref<64x32xf32, #tpu.memory_space<vmem>>, %arg7: memref<8x96xf32, #tpu.memory_space<vmem>>, %arg8: memref<2x8x32xf32, #tpu.memory_space<vmem>>) attributes {dimension_semantics = [#tpu.dimension_semantics<parallel>], iteration_bounds = array<i64: 1>, scalar_prefetch = 0 : i64, scratch_operands = 0 : i64, tpu.core_type = #tpu.core_type<tc>, window_params = [{transform_indices = @transform_0, window_bounds = array<i64: 2, 8, 32>}, {transform_indices = @transform_1, window_bounds = array<i64: 2, 1, 8>}, {pipeline_mode = #tpu.pipeline_mode<synchronous>, transform_indices = @transform_2, window_bounds = array<i64: 32, 96>}, {pipeline_mode = #tpu.pipeline_mode<synchronous>, transform_indices = @transform_3, window_bounds = array<i64: 32, 32>}, {pipeline_mode = #tpu.pipeline_mode<synchronous>, transform_indices = @transform_4, window_bounds = array<i64: 32, 64>}, {pipeline_mode = #tpu.pipeline_mode<synchronous>, transform_indices = @transform_5, window_bounds = array<i64: 64, 32>}, {pipeline_mode = #tpu.pipeline_mode<synchronous>, transform_indices = @transform_6, window_bounds = array<i64: 8, 96>}, {transform_indices = @transform_7, window_bounds = array<i64: 2, 8, 32>}]} {
    %c0 = arith.constant 0 : index
    %c0_0 = arith.constant 0 : index
    %c0_1 = arith.constant 0 : index
    %0 = vector.load %arg1[%c0, %c0_0, %c0_1] : memref<2x8x32xf32, #tpu.memory_space<vmem>>, vector<2x8x32xf32>
    %c0_2 = arith.constant 0 : index
    %c0_3 = arith.constant 0 : index
    %c0_4 = arith.constant 0 : index
    %1 = vector.load %arg2[%c0_2, %c0_3, %c0_4] : memref<2x1x8xf32, #tpu.memory_space<vmem>>, vector<2x1x8xf32>
    %2 = vector.shape_cast %0 : vector<2x8x32xf32> to vector<16x32xf32>
    %c0_5 = arith.constant 0 : index
    %c0_6 = arith.constant 0 : index
    %3 = vector.load %arg7[%c0_5, %c0_6] : memref<8x96xf32, #tpu.memory_space<vmem>>, vector<8x96xf32>
    %4 = vector.extract_strided_slice %3 {offsets = [0, 0], sizes = [1, 96], strides = [1, 1]} : vector<8x96xf32> to vector<1x96xf32>
    %5 = vector.extract_strided_slice %3 {offsets = [1, 0], sizes = [1, 64], strides = [1, 1]} : vector<8x96xf32> to vector<1x64xf32>
    %6 = vector.extract_strided_slice %3 {offsets = [2, 0], sizes = [1, 32], strides = [1, 1]} : vector<8x96xf32> to vector<1x32xf32>
    %7 = vector.extract_strided_slice %3 {offsets = [3, 0], sizes = [1, 32], strides = [1, 1]} : vector<8x96xf32> to vector<1x32xf32>
    %8 = vector.extract_strided_slice %3 {offsets = [4, 0], sizes = [1, 32], strides = [1, 1]} : vector<8x96xf32> to vector<1x32xf32>
    %9 = vector.extract_strided_slice %3 {offsets = [5, 0], sizes = [1, 32], strides = [1, 1]} : vector<8x96xf32> to vector<1x32xf32>
    %10 = vector.extract_strided_slice %3 {offsets = [6, 0], sizes = [1, 32], strides = [1, 1]} : vector<8x96xf32> to vector<1x32xf32>
    %11 = vector.extract_strided_slice %3 {offsets = [7, 0], sizes = [1, 32], strides = [1, 1]} : vector<8x96xf32> to vector<1x32xf32>
    %c0_7 = arith.constant 0 : index
    %c0_8 = arith.constant 0 : index
    %12 = vector.load %arg3[%c0_7, %c0_8] : memref<32x96xf32, #tpu.memory_space<vmem>>, vector<32x96xf32>
    %cst = arith.constant dense<0.000000e+00> : vector<16x96xf32>
    %13 = tpu.matmul %2, %12, %cst {dimension_numbers = #tpu.dot_dimension_numbers<[1], [0], [0], [1], [0, 0, 1, 1], [], []>} : vector<16x32xf32>, vector<32x96xf32>, vector<16x96xf32> -> vector<16x96xf32>
    %14 = vector.broadcast %4 : vector<1x96xf32> to vector<16x96xf32>
    %15 = arith.addf %13, %14 : vector<16x96xf32>
    %16 = vector.extract_strided_slice %15 {offsets = [0, 0], sizes = [16, 8], strides = [1, 1]} : vector<16x96xf32> to vector<16x8xf32>
    %17 = vector.shape_cast %16 : vector<16x8xf32> to vector<2x8x8xf32>
    %18 = vector.extract_strided_slice %15 {offsets = [0, 32], sizes = [16, 8], strides = [1, 1]} : vector<16x96xf32> to vector<16x8xf32>
    %19 = vector.shape_cast %18 : vector<16x8xf32> to vector<2x8x8xf32>
    %20 = vector.extract_strided_slice %15 {offsets = [0, 64], sizes = [16, 8], strides = [1, 1]} : vector<16x96xf32> to vector<16x8xf32>
    %21 = vector.shape_cast %20 : vector<16x8xf32> to vector<2x8x8xf32>
    "tpu.trace_start"() <{level = 10 : i32, message = "bqd,bkd->bqk"}> : () -> ()
    %cst_9 = arith.constant dense<0.000000e+00> : vector<2x8x8xf32>
    %22 = tpu.matmul %17, %19, %cst_9 {dimension_numbers = #tpu.dot_dimension_numbers<[2], [2], [1], [1], [0, 0, 0, 1, 1, 1], [0], [0]>} : vector<2x8x8xf32>, vector<2x8x8xf32>, vector<2x8x8xf32> -> vector<2x8x8xf32>
    "tpu.trace_stop"() : () -> ()
    %23 = vector.broadcast %1 : vector<2x1x8xf32> to vector<2x8x8xf32>
    %24 = arith.addf %22, %23 : vector<2x8x8xf32>
    %cst_10 = arith.constant dense<0xFF800000> : vector<2x8xf32>
    %25 = vector.multi_reduction <maximumf>, %24, %cst_10 [2] : vector<2x8x8xf32> to vector<2x8xf32>
    %26 = vector.shape_cast %25 : vector<2x8xf32> to vector<2x8x1xf32>
    %27 = vector.broadcast %26 : vector<2x8x1xf32> to vector<2x8x8xf32>
    %28 = arith.subf %24, %27 : vector<2x8x8xf32>
    %29 = math.exp %28 : vector<2x8x8xf32>
    %cst_11 = arith.constant dense<0.000000e+00> : vector<2x8xf32>
    %30 = vector.multi_reduction <add>, %29, %cst_11 [2] : vector<2x8x8xf32> to vector<2x8xf32>
    %31 = vector.shape_cast %30 : vector<2x8xf32> to vector<2x8x1xf32>
    %32 = tpu.reciprocal %31 {approx = true} : vector<2x8x1xf32> -> vector<2x8x1xf32>
    %33 = vector.broadcast %32 : vector<2x8x1xf32> to vector<2x8x8xf32>
    %34 = arith.mulf %29, %33 : vector<2x8x8xf32>
    "tpu.trace_start"() <{level = 10 : i32, message = "bqk,bkd->bqd"}> : () -> ()
    %cst_12 = arith.constant dense<0.000000e+00> : vector<2x8x8xf32>
    %35 = tpu.matmul %34, %21, %cst_12 {dimension_numbers = #tpu.dot_dimension_numbers<[2], [1], [1], [2], [0, 0, 0, 1, 1, 2], [0], [0]>} : vector<2x8x8xf32>, vector<2x8x8xf32>, vector<2x8x8xf32> -> vector<2x8x8xf32>
    "tpu.trace_stop"() : () -> ()
    %36 = vector.extract_strided_slice %15 {offsets = [0, 8], sizes = [16, 8], strides = [1, 1]} : vector<16x96xf32> to vector<16x8xf32>
    %37 = vector.shape_cast %36 : vector<16x8xf32> to vector<2x8x8xf32>
    %38 = vector.extract_strided_slice %15 {offsets = [0, 40], sizes = [16, 8], strides = [1, 1]} : vector<16x96xf32> to vector<16x8xf32>
    %39 = vector.shape_cast %38 : vector<16x8xf32> to vector<2x8x8xf32>
    %40 = vector.extract_strided_slice %15 {offsets = [0, 72], sizes = [16, 8], strides = [1, 1]} : vector<16x96xf32> to vector<16x8xf32>
    %41 = vector.shape_cast %40 : vector<16x8xf32> to vector<2x8x8xf32>
    "tpu.trace_start"() <{level = 10 : i32, message = "bqd,bkd->bqk"}> : () -> ()
    %cst_13 = arith.constant dense<0.000000e+00> : vector<2x8x8xf32>
    %42 = tpu.matmul %37, %39, %cst_13 {dimension_numbers = #tpu.dot_dimension_numbers<[2], [2], [1], [1], [0, 0, 0, 1, 1, 1], [0], [0]>} : vector<2x8x8xf32>, vector<2x8x8xf32>, vector<2x8x8xf32> -> vector<2x8x8xf32>
    "tpu.trace_stop"() : () -> ()
    %43 = vector.broadcast %1 : vector<2x1x8xf32> to vector<2x8x8xf32>
    %44 = arith.addf %42, %43 : vector<2x8x8xf32>
    %cst_14 = arith.constant dense<0xFF800000> : vector<2x8xf32>
    %45 = vector.multi_reduction <maximumf>, %44, %cst_14 [2] : vector<2x8x8xf32> to vector<2x8xf32>
    %46 = vector.shape_cast %45 : vector<2x8xf32> to vector<2x8x1xf32>
    %47 = vector.broadcast %46 : vector<2x8x1xf32> to vector<2x8x8xf32>
    %48 = arith.subf %44, %47 : vector<2x8x8xf32>
    %49 = math.exp %48 : vector<2x8x8xf32>
    %cst_15 = arith.constant dense<0.000000e+00> : vector<2x8xf32>
    %50 = vector.multi_reduction <add>, %49, %cst_15 [2] : vector<2x8x8xf32> to vector<2x8xf32>
    %51 = vector.shape_cast %50 : vector<2x8xf32> to vector<2x8x1xf32>
    %52 = tpu.reciprocal %51 {approx = true} : vector<2x8x1xf32> -> vector<2x8x1xf32>
    %53 = vector.broadcast %52 : vector<2x8x1xf32> to vector<2x8x8xf32>
    %54 = arith.mulf %49, %53 : vector<2x8x8xf32>
    "tpu.trace_start"() <{level = 10 : i32, message = "bqk,bkd->bqd"}> : () -> ()
    %cst_16 = arith.constant dense<0.000000e+00> : vector<2x8x8xf32>
    %55 = tpu.matmul %54, %41, %cst_16 {dimension_numbers = #tpu.dot_dimension_numbers<[2], [1], [1], [2], [0, 0, 0, 1, 1, 2], [0], [0]>} : vector<2x8x8xf32>, vector<2x8x8xf32>, vector<2x8x8xf32> -> vector<2x8x8xf32>
    "tpu.trace_stop"() : () -> ()
    %56 = vector.extract_strided_slice %15 {offsets = [0, 16], sizes = [16, 8], strides = [1, 1]} : vector<16x96xf32> to vector<16x8xf32>
    %57 = vector.shape_cast %56 : vector<16x8xf32> to vector<2x8x8xf32>
    %58 = vector.extract_strided_slice %15 {offsets = [0, 48], sizes = [16, 8], strides = [1, 1]} : vector<16x96xf32> to vector<16x8xf32>
    %59 = vector.shape_cast %58 : vector<16x8xf32> to vector<2x8x8xf32>
    %60 = vector.extract_strided_slice %15 {offsets = [0, 80], sizes = [16, 8], strides = [1, 1]} : vector<16x96xf32> to vector<16x8xf32>
    %61 = vector.shape_cast %60 : vector<16x8xf32> to vector<2x8x8xf32>
    "tpu.trace_start"() <{level = 10 : i32, message = "bqd,bkd->bqk"}> : () -> ()
    %cst_17 = arith.constant dense<0.000000e+00> : vector<2x8x8xf32>
    %62 = tpu.matmul %57, %59, %cst_17 {dimension_numbers = #tpu.dot_dimension_numbers<[2], [2], [1], [1], [0, 0, 0, 1, 1, 1], [0], [0]>} : vector<2x8x8xf32>, vector<2x8x8xf32>, vector<2x8x8xf32> -> vector<2x8x8xf32>
    "tpu.trace_stop"() : () -> ()
    %63 = vector.broadcast %1 : vector<2x1x8xf32> to vector<2x8x8xf32>
    %64 = arith.addf %62, %63 : vector<2x8x8xf32>
    %cst_18 = arith.constant dense<0xFF800000> : vector<2x8xf32>
    %65 = vector.multi_reduction <maximumf>, %64, %cst_18 [2] : vector<2x8x8xf32> to vector<2x8xf32>
    %66 = vector.shape_cast %65 : vector<2x8xf32> to vector<2x8x1xf32>
    %67 = vector.broadcast %66 : vector<2x8x1xf32> to vector<2x8x8xf32>
    %68 = arith.subf %64, %67 : vector<2x8x8xf32>
    %69 = math.exp %68 : vector<2x8x8xf32>
    %cst_19 = arith.constant dense<0.000000e+00> : vector<2x8xf32>
    %70 = vector.multi_reduction <add>, %69, %cst_19 [2] : vector<2x8x8xf32> to vector<2x8xf32>
    %71 = vector.shape_cast %70 : vector<2x8xf32> to vector<2x8x1xf32>
    %72 = tpu.reciprocal %71 {approx = true} : vector<2x8x1xf32> -> vector<2x8x1xf32>
    %73 = vector.broadcast %72 : vector<2x8x1xf32> to vector<2x8x8xf32>
    %74 = arith.mulf %69, %73 : vector<2x8x8xf32>
    "tpu.trace_start"() <{level = 10 : i32, message = "bqk,bkd->bqd"}> : () -> ()
    %cst_20 = arith.constant dense<0.000000e+00> : vector<2x8x8xf32>
    %75 = tpu.matmul %74, %61, %cst_20 {dimension_numbers = #tpu.dot_dimension_numbers<[2], [1], [1], [2], [0, 0, 0, 1, 1, 2], [0], [0]>} : vector<2x8x8xf32>, vector<2x8x8xf32>, vector<2x8x8xf32> -> vector<2x8x8xf32>
    "tpu.trace_stop"() : () -> ()
    %76 = vector.extract_strided_slice %15 {offsets = [0, 24], sizes = [16, 8], strides = [1, 1]} : vector<16x96xf32> to vector<16x8xf32>
    %77 = vector.shape_cast %76 : vector<16x8xf32> to vector<2x8x8xf32>
    %78 = vector.extract_strided_slice %15 {offsets = [0, 56], sizes = [16, 8], strides = [1, 1]} : vector<16x96xf32> to vector<16x8xf32>
    %79 = vector.shape_cast %78 : vector<16x8xf32> to vector<2x8x8xf32>
    %80 = vector.extract_strided_slice %15 {offsets = [0, 88], sizes = [16, 8], strides = [1, 1]} : vector<16x96xf32> to vector<16x8xf32>
    %81 = vector.shape_cast %80 : vector<16x8xf32> to vector<2x8x8xf32>
    "tpu.trace_start"() <{level = 10 : i32, message = "bqd,bkd->bqk"}> : () -> ()
    %cst_21 = arith.constant dense<0.000000e+00> : vector<2x8x8xf32>
    %82 = tpu.matmul %77, %79, %cst_21 {dimension_numbers = #tpu.dot_dimension_numbers<[2], [2], [1], [1], [0, 0, 0, 1, 1, 1], [0], [0]>} : vector<2x8x8xf32>, vector<2x8x8xf32>, vector<2x8x8xf32> -> vector<2x8x8xf32>
    "tpu.trace_stop"() : () -> ()
    %83 = vector.broadcast %1 : vector<2x1x8xf32> to vector<2x8x8xf32>
    %84 = arith.addf %82, %83 : vector<2x8x8xf32>
    %cst_22 = arith.constant dense<0xFF800000> : vector<2x8xf32>
    %85 = vector.multi_reduction <maximumf>, %84, %cst_22 [2] : vector<2x8x8xf32> to vector<2x8xf32>
    %86 = vector.shape_cast %85 : vector<2x8xf32> to vector<2x8x1xf32>
    %87 = vector.broadcast %86 : vector<2x8x1xf32> to vector<2x8x8xf32>
    %88 = arith.subf %84, %87 : vector<2x8x8xf32>
    %89 = math.exp %88 : vector<2x8x8xf32>
    %cst_23 = arith.constant dense<0.000000e+00> : vector<2x8xf32>
    %90 = vector.multi_reduction <add>, %89, %cst_23 [2] : vector<2x8x8xf32> to vector<2x8xf32>
    %91 = vector.shape_cast %90 : vector<2x8xf32> to vector<2x8x1xf32>
    %92 = tpu.reciprocal %91 {approx = true} : vector<2x8x1xf32> -> vector<2x8x1xf32>
    %93 = vector.broadcast %92 : vector<2x8x1xf32> to vector<2x8x8xf32>
    %94 = arith.mulf %89, %93 : vector<2x8x8xf32>
    "tpu.trace_start"() <{level = 10 : i32, message = "bqk,bkd->bqd"}> : () -> ()
    %cst_24 = arith.constant dense<0.000000e+00> : vector<2x8x8xf32>
    %95 = tpu.matmul %94, %81, %cst_24 {dimension_numbers = #tpu.dot_dimension_numbers<[2], [1], [1], [2], [0, 0, 0, 1, 1, 2], [0], [0]>} : vector<2x8x8xf32>, vector<2x8x8xf32>, vector<2x8x8xf32> -> vector<2x8x8xf32>
    "tpu.trace_stop"() : () -> ()
    %96 = tpu.concatenate %35, %55, %75, %95 in 2 : vector<2x8x8xf32>, vector<2x8x8xf32>, vector<2x8x8xf32>, vector<2x8x8xf32> -> vector<2x8x32xf32>
    %97 = vector.shape_cast %96 : vector<2x8x32xf32> to vector<16x32xf32>
    %c0_25 = arith.constant 0 : index
    %c0_26 = arith.constant 0 : index
    %98 = vector.load %arg4[%c0_25, %c0_26] : memref<32x32xf32, #tpu.memory_space<vmem>>, vector<32x32xf32>
    %cst_27 = arith.constant dense<0.000000e+00> : vector<16x32xf32>
    %99 = tpu.matmul %97, %98, %cst_27 {dimension_numbers = #tpu.dot_dimension_numbers<[1], [0], [0], [1], [0, 0, 1, 1], [], []>} : vector<16x32xf32>, vector<32x32xf32>, vector<16x32xf32> -> vector<16x32xf32>
    %100 = vector.broadcast %6 : vector<1x32xf32> to vector<16x32xf32>
    %101 = arith.addf %99, %100 : vector<16x32xf32>
    %102 = arith.addf %101, %2 : vector<16x32xf32>
    %cst_28 = arith.constant dense<0.000000e+00> : vector<16xf32>
    %103 = vector.multi_reduction <add>, %102, %cst_28 [1] : vector<16x32xf32> to vector<16xf32>
    %104 = vector.shape_cast %103 : vector<16xf32> to vector<16x1xf32>
    %cst_29 = arith.constant 3.200000e+01 : f32
    %105 = vector.broadcast %cst_29 : f32 to vector<16x1xf32>
    %106 = arith.divf %104, %105 : vector<16x1xf32>
    %107 = vector.broadcast %106 : vector<16x1xf32> to vector<16x32xf32>
    %108 = arith.subf %102, %107 : vector<16x32xf32>
    %109 = arith.mulf %108, %108 : vector<16x32xf32>
    %cst_30 = arith.constant dense<0.000000e+00> : vector<16xf32>
    %110 = vector.multi_reduction <add>, %109, %cst_30 [1] : vector<16x32xf32> to vector<16xf32>
    %111 = vector.shape_cast %110 : vector<16xf32> to vector<16x1xf32>
    %cst_31 = arith.constant 3.200000e+01 : f32
    %112 = vector.broadcast %cst_31 : f32 to vector<16x1xf32>
    %113 = arith.divf %111, %112 : vector<16x1xf32>
    %114 = vector.broadcast %106 : vector<16x1xf32> to vector<16x32xf32>
    %115 = arith.subf %102, %114 : vector<16x32xf32>
    %cst_32 = arith.constant 9.99999974E-6 : f32
    %116 = vector.broadcast %cst_32 : f32 to vector<16x1xf32>
    %117 = arith.addf %113, %116 : vector<16x1xf32>
    %118 = math.rsqrt %117 : vector<16x1xf32>
    %119 = vector.broadcast %118 : vector<16x1xf32> to vector<16x32xf32>
    %120 = arith.mulf %115, %119 : vector<16x32xf32>
    %121 = vector.broadcast %7 : vector<1x32xf32> to vector<16x32xf32>
    %122 = arith.mulf %120, %121 : vector<16x32xf32>
    %123 = vector.broadcast %8 : vector<1x32xf32> to vector<16x32xf32>
    %124 = arith.addf %122, %123 : vector<16x32xf32>
    %c0_33 = arith.constant 0 : index
    %c0_34 = arith.constant 0 : index
    %125 = vector.load %arg5[%c0_33, %c0_34] : memref<32x64xf32, #tpu.memory_space<vmem>>, vector<32x64xf32>
    %cst_35 = arith.constant dense<0.000000e+00> : vector<16x64xf32>
    %126 = tpu.matmul %124, %125, %cst_35 {dimension_numbers = #tpu.dot_dimension_numbers<[1], [0], [0], [1], [0, 0, 1, 1], [], []>} : vector<16x32xf32>, vector<32x64xf32>, vector<16x64xf32> -> vector<16x64xf32>
    %127 = vector.broadcast %5 : vector<1x64xf32> to vector<16x64xf32>
    %128 = arith.addf %126, %127 : vector<16x64xf32>
    %cst_36 = arith.constant 0.000000e+00 : f32
    %129 = vector.broadcast %cst_36 : f32 to vector<16x64xf32>
    %130 = arith.maximumf %128, %129 : vector<16x64xf32>
    %c0_37 = arith.constant 0 : index
    %c0_38 = arith.constant 0 : index
    %131 = vector.load %arg6[%c0_37, %c0_38] : memref<64x32xf32, #tpu.memory_space<vmem>>, vector<64x32xf32>
    %cst_39 = arith.constant dense<0.000000e+00> : vector<16x32xf32>
    %132 = tpu.matmul %130, %131, %cst_39 {dimension_numbers = #tpu.dot_dimension_numbers<[1], [0], [0], [1], [0, 0, 1, 1], [], []>} : vector<16x64xf32>, vector<64x32xf32>, vector<16x32xf32> -> vector<16x32xf32>
    %133 = vector.broadcast %9 : vector<1x32xf32> to vector<16x32xf32>
    %134 = arith.addf %132, %133 : vector<16x32xf32>
    %135 = arith.addf %134, %124 : vector<16x32xf32>
    %cst_40 = arith.constant dense<0.000000e+00> : vector<16xf32>
    %136 = vector.multi_reduction <add>, %135, %cst_40 [1] : vector<16x32xf32> to vector<16xf32>
    %137 = vector.shape_cast %136 : vector<16xf32> to vector<16x1xf32>
    %cst_41 = arith.constant 3.200000e+01 : f32
    %138 = vector.broadcast %cst_41 : f32 to vector<16x1xf32>
    %139 = arith.divf %137, %138 : vector<16x1xf32>
    %140 = vector.broadcast %139 : vector<16x1xf32> to vector<16x32xf32>
    %141 = arith.subf %135, %140 : vector<16x32xf32>
    %142 = arith.mulf %141, %141 : vector<16x32xf32>
    %cst_42 = arith.constant dense<0.000000e+00> : vector<16xf32>
    %143 = vector.multi_reduction <add>, %142, %cst_42 [1] : vector<16x32xf32> to vector<16xf32>
    %144 = vector.shape_cast %143 : vector<16xf32> to vector<16x1xf32>
    %cst_43 = arith.constant 3.200000e+01 : f32
    %145 = vector.broadcast %cst_43 : f32 to vector<16x1xf32>
    %146 = arith.divf %144, %145 : vector<16x1xf32>
    %147 = vector.broadcast %139 : vector<16x1xf32> to vector<16x32xf32>
    %148 = arith.subf %135, %147 : vector<16x32xf32>
    %cst_44 = arith.constant 9.99999974E-6 : f32
    %149 = vector.broadcast %cst_44 : f32 to vector<16x1xf32>
    %150 = arith.addf %146, %149 : vector<16x1xf32>
    %151 = math.rsqrt %150 : vector<16x1xf32>
    %152 = vector.broadcast %151 : vector<16x1xf32> to vector<16x32xf32>
    %153 = arith.mulf %148, %152 : vector<16x32xf32>
    %154 = vector.broadcast %10 : vector<1x32xf32> to vector<16x32xf32>
    %155 = arith.mulf %153, %154 : vector<16x32xf32>
    %156 = vector.broadcast %11 : vector<1x32xf32> to vector<16x32xf32>
    %157 = arith.addf %155, %156 : vector<16x32xf32>
    %158 = vector.shape_cast %157 : vector<16x32xf32> to vector<2x8x32xf32>
    %c0_45 = arith.constant 0 : index
    %c0_46 = arith.constant 0 : index
    %c0_47 = arith.constant 0 : index
    %159 = vector.load %arg8[%c0_45, %c0_46, %c0_47] : memref<2x8x32xf32, #tpu.memory_space<vmem>>, vector<2x8x32xf32>
    tpu.vector_store %arg8[%c0_45, %c0_46, %c0_47], %158 {strides = array<i32>} : memref<2x8x32xf32, #tpu.memory_space<vmem>>, vector<2x8x32xf32>,
    return
  }
  func.func @transform_0(%arg0: i32) -> (i32, i32, i32) {
    %c0_i32 = arith.constant 0 : i32
    %c0_i32_0 = arith.constant 0 : i32
    %c0_i32_1 = arith.constant 0 : i32
    return %arg0, %c0_i32, %c0_i32_0 : i32, i32, i32
  }
  func.func @transform_1(%arg0: i32) -> (i32, i32, i32) {
    %c0_i32 = arith.constant 0 : i32
    %c0_i32_0 = arith.constant 0 : i32
    %c0_i32_1 = arith.constant 0 : i32
    return %arg0, %c0_i32, %c0_i32_0 : i32, i32, i32
  }
  func.func @transform_2(%arg0: i32) -> (i32, i32) {
    %c0_i32 = arith.constant 0 : i32
    %c0_i32_0 = arith.constant 0 : i32
    %c0_i32_1 = arith.constant 0 : i32
    return %c0_i32, %c0_i32_0 : i32, i32
  }
  func.func @transform_3(%arg0: i32) -> (i32, i32) {
    %c0_i32 = arith.constant 0 : i32
    %c0_i32_0 = arith.constant 0 : i32
    %c0_i32_1 = arith.constant 0 : i32
    return %c0_i32, %c0_i32_0 : i32, i32
  }
  func.func @transform_4(%arg0: i32) -> (i32, i32) {
    %c0_i32 = arith.constant 0 : i32
    %c0_i32_0 = arith.constant 0 : i32
    %c0_i32_1 = arith.constant 0 : i32
    return %c0_i32, %c0_i32_0 : i32, i32
  }
  func.func @transform_5(%arg0: i32) -> (i32, i32) {
    %c0_i32 = arith.constant 0 : i32
    %c0_i32_0 = arith.constant 0 : i32
    %c0_i32_1 = arith.constant 0 : i32
    return %c0_i32, %c0_i32_0 : i32, i32
  }
  func.func @transform_6(%arg0: i32) -> (i32, i32) {
    %c0_i32 = arith.constant 0 : i32
    %c0_i32_0 = arith.constant 0 : i32
    %c0_i32_1 = arith.constant 0 : i32
    return %c0_i32, %c0_i32_0 : i32, i32
  }
  func.func @transform_7(%arg0: i32) -> (i32, i32, i32) {
    %c0_i32 = arith.constant 0 : i32
    %c0_i32_0 = arith.constant 0 : i32
    %c0_i32_1 = arith.constant 0 : i32
    return %arg0, %c0_i32, %c0_i32_0 : i32, i32, i32
  }
}

</mosaic_0001>

<bundles_post_ra>
// kernel: encoder_forward.3
= control target key start
LH: loop header
LB: loop body
LE: loop exit
PB: predicated region body
PF: predicated region fallthrough
CT: control target
= control target key end

     0   :  { %s1259_s0 = inlined_call_operand.vmem [shape: f32[2,8,32], index: 0, kind: input, shape index: {}]   ;;  %s1260_s1 = inlined_call_operand.vmem [shape: f32[2,1,8], index: 1, kind: input, shape index: {}]   ;;  %s1261_s2 = inlined_call_operand.vmem [shape: f32[32,96], index: 2, kind: input, shape index: {}]   ;;  %s1262_s3 = inlined_call_operand.vmem [shape: f32[32,32], index: 3, kind: input, shape index: {}]   ;;  %s1263_s4 = inlined_call_operand.vmem [shape: f32[32,64], index: 4, kind: input, shape index: {}]   ;;  %s1264_s5 = inlined_call_operand.vmem [shape: f32[64,32], index: 5, kind: input, shape index: {}]   ;;  %s1265_s6 = inlined_call_operand.vmem [shape: f32[8,96], index: 6, kind: input, shape index: {}]   ;;  %s1266_s7 = inlined_call_operand.hbm [shape: f32[2,8,32], index: 7, kind: output, shape index: {}]  }
   0x1   :  { %v35_v0 = vld [vmem:[%s1261_s2 + $0x18] sm:$0xff]  ;;  %v34_v1 = vld [vmem:[%s1261_s2 + $0x10] sm:$0xff]  ;;  %v33_v2 = vld [vmem:[%s1261_s2 + $0x8] sm:$0xff] }
   0x2   :  { %56 = vmatpush.msra.mxu0 %v35_v0 }
   0x4   :  { %57 = vmatpush.msra.mxu0 %v34_v1 }
   0x5   :  { %12 = vsyncpa [#allocation3], 0  ;;  %v32_v3 = vld [vmem:[%s1261_s2] sm:$0xff]  ;;  %vm37_vm0 = vcmask 261120   ;;  %v1067_v5 = vld [vmem:[%s1259_s0 + $0x8] sm:$0xff]  ;;  %s988_s14 = smov 64  }
   0x6   :  { %58 = vmatpush.msra.mxu0 %v33_v2  ;;  %v1060_v4 = vld [vmem:[%s1259_s0] sm:$0xff]  ;;  %s989_s15 = smov 96   ;;  %s990_s0 = smov 88   ;;  %vm76_vm1 = vcmask 64512   ;;  %vm618_vm2 = vcmask 130048   ;;  %vm621_vm3 = vcmask 195584  }
   0x7   :  { %v1074_v6 = vld [vmem:[%s1265_s6] sm:$0xff]  ;;  %s991_s6 = smov 120   ;;  %s992_s16 = smov 72   ;;  %vm762_vm11 = vcmask 523264  }
   0x8   :  { %59 = vmatpush.msra.mxu0 %v32_v3  ;;  %v36_v7 = vperm.slane %v1074_v6, 0  ;;  %s993_s17 = smov 80   ;;  %s994_s18 = smov 112   ;;  %v918_v23 = vld [vmem:[%s1260_s1] ss:$0 sm:$0xff] }
   0x9   :  { %864 = vmatmul.msk.f32.vlgmr.msra.gmra.mxu0 %vm37_vm0, %v1060_v4  ;;  %s995_s19 = smov 104   ;;  %v919_v27 = vld [vmem:[%s1260_s1 + $0x1] ss:$0 sm:$0xff]  ;;  %s996_s1 = smov 56  }
   0xa   :  { %s997_s24 = smov 40   ;;  %s998_s25 = smov 48  }
   0xb   :  { %s999_s26 = smov 8   ;;  %s1000_s27 = smov 16  }
   0xc   :  { %s1001_s28 = smov 24   ;;  %s852_s2 = sshll.u32 %s1266_s7, 4  ;;  %s853_s2 = int_to_ptr.hbm [resolvable:$true] %s852_s2 }
  0x11   :  { %865 = vmatmul.msk.f32.gmra.mxu0 %vm37_vm0, %v1067_v5 }
  0x86   :  { %v61_v8 = vpop.f32.mrf.mxu0 }
  0x87   :  { %v1077_v9 = vadd.f32 %v61_v8, %v36_v7 }
  0x89   :  { %150 = vrot.lane.b32.xlu2 %v1077_v9, %s988_s14  ;;  %74 = vrot.lane.b32.xlu0 %v1077_v9, %s989_s15 }
  0x8e   :  { %v64_v10 = vpop.f32.mrf.mxu0 }
  0x8f   :  { %v1082_v11 = vadd.f32 %v64_v10, %v36_v7 }
  0x91   :  { %102 = vrot.lane.b32.xlu1 %v1082_v11, %s989_s15  ;;  %232 = vrot.lane.b32.xlu2 %v1082_v11, %s990_s0 }
  0x99   :  { %202 = vrot.lane.b32.xlu1 %v1077_v9, %s991_s6  ;;  %230 = vrot.lane.b32.xlu2 %v1082_v11, %s991_s6 }
  0xa1   :  { %464 = vrot.lane.b32.xlu1 %v1077_v9, %s992_s16  ;;  %204 = vrot.lane.b32.xlu2 %v1077_v9, %s990_s0 }
  0xa9   :  { %334 = vrot.lane.b32.xlu2 %v1077_v9, %s993_s17 }
  0xb1   :  { %332 = vrot.lane.b32.xlu2 %v1077_v9, %s994_s18 }
  0xb9   :  { %462 = vrot.lane.b32.xlu2 %v1077_v9, %s995_s19 }
  0xc1   :  { %492 = vrot.lane.b32.xlu2 %v1082_v11, %s992_s16 }
  0xe3   :  { %v151_v12 = vpop.permute.xlu2 %150 }
  0xeb   :  { %v233_v13 = vpop.permute.xlu2 %232 }
  0xf3   :  { %v231_v14 = vpop.permute.xlu2 %230 }
  0xfb   :  { %v75_v15 = vpop.permute.xlu0 %74  ;;  %v205_v16 = vpop.permute.xlu2 %204 }
  0xfc   :  { %866 = vmatpush.xpose.msk.msra.mxu1 %vm76_vm1, %v75_v15 }
  0xff   :  { %867 = vmatmul.msk.f32.vlgmr.msra.gmra.mxu1 %vm76_vm1, %v1077_v9 }
 0x100   :  { %171 = vmatpush.msrb.mxu1 %v151_v12 }
 0x102   :  { %872 = vmatpush.xpose.msk.msra.mxu1 %vm76_vm1, %v205_v16 }
 0x103   :  { %v103_v17 = vpop.permute.xlu1 %102  ;;  %v335_v18 = vpop.permute.xlu2 %334 }
 0x104   :  { %868 = vmatpush.xpose.msk.msra.mxu2 %vm76_vm1, %v103_v17  ;;  %v913_v17 = vpack.i.bf16 %v1082_v11, %v1077_v9 }
 0x107   :  { %869 = vmatmul.msk.f32.vlgmr.msra.gmra.mxu2 %vm76_vm1, %v1082_v11 }
 0x108   :  { %874 = vmatpush.xpose.msk.msrb.mxu2 %vm76_vm1, %v233_v13 }
 0x10b   :  { %v203_v19 = vpop.permute.xlu1 %202  ;;  %v333_v21 = vpop.permute.xlu2 %332 }
 0x10c   :  { %878 = vmatpush.xpose.msk.msra.mxu2 %vm76_vm1, %v335_v18 }
 0x10f   :  { %875 = vmatmul.msk.f32.vlgmr.msrb.gmra.mxu2 %vm76_vm1, %v231_v14 }
 0x113   :  { %v465_v20 = vpop.permute.xlu1 %464  ;;  %v463_v22 = vpop.permute.xlu2 %462 }
 0x114   :  { %884 = vmatpush.xpose.msk.msrb.mxu2 %vm76_vm1, %v465_v20 }
 0x117   :  { %879 = vmatmul.msk.f32.vlgmr.msra.gmra.mxu2 %vm76_vm1, %v333_v21 }
 0x11b   :  { %v493_v46 = vpop.permute.xlu2 %492 }
 0x11f   :  { %885 = vmatmul.msk.f32.vlgmr.msrb.gmra.mxu2 %vm76_vm1, %v463_v22 }
 0x17c   :  { %v98_v24 = vpop.f32.mrf.mxu1 }
 0x17d   :  { %v99_v25 = vadd.f32 %v918_v23, %v98_v24 }
 0x17f   :  { %v128_v26 = vsel %vm76_vm1, %v99_v25, -inf }
 0x180   :  { %129 = vmax.xlane.f32.xlu0 %v128_v26 }
 0x18a   :  { %v125_v28 = vpop.f32.mrf.mxu2 }
 0x18b   :  { %v126_v29 = vadd.f32 %v919_v27, %v125_v28 }
 0x18d   :  { %v131_v30 = vsel %vm76_vm1, %v126_v29, -inf }
 0x18e   :  { %132 = vmax.xlane.f32.xlu2 %v131_v30 }
 0x192   :  { %v255_v31 = vpop.f32.mrf.mxu2 }
 0x193   :  { %v256_v40 = vadd.f32 %v919_v27, %v255_v31 }
 0x194   :  { %360 = vrot.lane.b32.xlu0 %v1082_v11, %s994_s18 }
 0x195   :  { %v261_v41 = vsel %vm76_vm1, %v256_v40, -inf }
 0x196   :  { %262 = vmax.xlane.f32.xlu2 %v261_v41 }
 0x19a   :  { %v357_v32 = vpop.f32.mrf.mxu2 }
 0x19b   :  { %v358_v33 = vadd.f32 %v918_v23, %v357_v32 }
 0x19d   :  { %v388_v34 = vsel %vm76_vm1, %v358_v33, -inf }
 0x1a2   :  { %v487_v55 = vpop.f32.mrf.mxu2 }
 0x1a3   :  { %v488_v57 = vadd.f32 %v918_v23, %v487_v55 }
 0x1a5   :  { %v518_v62 = vsel %vm76_vm1, %v488_v57, -inf }
 0x1be   :  { %389 = vmax.xlane.f32.xlu0 %v388_v34 }
 0x1f3   :  { %v130_v35 = vpop.xlane.xlu0 %129 }
 0x1f4   :  { %v134_v36 = vsub.f32 %v99_v25, %v130_v35 }
 0x1f6   :  { %v136_v37 = vmul.f32 1.442695, %v134_v36 }
 0x1f8   :  { %920 = vpow2.f32 %v136_v37 }
 0x1fe   :  { %v921_v38 = vpop.eup %920 }
 0x1ff   :  { %v140_v39 = vsel %vm76_vm1, %v921_v38, 0.0 }
 0x200   :  { %141 = vadd.xlane.f32.xlu1 %v140_v39 }
 0x201   :  { %v133_v50 = vpop.xlane.xlu2 %132 }
 0x202   :  { %v135_v53 = vsub.f32 %v126_v29, %v133_v50 }
 0x204   :  { %v138_v56 = vmul.f32 1.442695, %v135_v53 }
 0x206   :  { %v361_v47 = vpop.permute.xlu0 %360 }
 0x209   :  { %v263_v1 = vpop.xlane.xlu2 %262 }
 0x20a   :  { %v265_v3 = vsub.f32 %v256_v40, %v263_v1 }
 0x20c   :  { %v268_v13 = vmul.f32 1.442695, %v265_v3 }
 0x219   :  { %362 = vrot.lane.b32.xlu1 %v1082_v11, %s993_s17 }
 0x221   :  { %490 = vrot.lane.b32.xlu1 %v1082_v11, %s995_s19 }
 0x231   :  { %v390_v58 = vpop.xlane.xlu0 %389 }
 0x232   :  { %v394_v59 = vsub.f32 %v358_v33, %v390_v58 }
 0x234   :  { %v396_v0 = vmul.f32 1.442695, %v394_v59 }
 0x273   :  { %v142_v42 = vpop.xlane.xlu1 %141 }
 0x274   :  { %922 = vrcp.f32 %v142_v42 }
 0x275   :  { %924 = vpow2.f32 %v138_v56 }
 0x276   :  { %926 = vpow2.f32 %v396_v0 }
 0x277   :  { %928 = vpow2.f32 %v268_v13 }
 0x27a   :  { %v923_v43 = vpop.eup %922 }
 0x27b   :  { %v148_v44 = vmul.f32 %v923_v43, %v921_v38  ;;  %v925_v2 = vpop.eup %924 }
 0x27c   :  { %v143_v10 = vsel %vm76_vm1, %v925_v2, 0.0  ;;  %v1140_v14 = vpop.eup %926 }
 0x27d   :  { %870 = vmatmul.msk.f32.vlgmr.msrb.gmra.mxu1 %vm76_vm1, %v148_v44  ;;  %v400_v15 = vsel %vm76_vm1, %v1140_v14, 0.0  ;;  %v929_v16 = vpop.eup %928 }
 0x27e   :  { %v273_v18 = vsel %vm76_vm1, %v929_v16, 0.0 }
 0x285   :  { %873 = vmatmul.msk.f32.vlgmr.msra.gmra.mxu1 %vm76_vm1, %v203_v19 }
 0x28b   :  { %v363_v45 = vpop.permute.xlu1 %362 }
 0x28c   :  { %880 = vmatpush.xpose.msk.msrb.mxu0 %vm76_vm1, %v363_v45 }
 0x28f   :  { %881 = vmatmul.msk.f32.vlgmr.msrb.gmra.mxu0 %vm76_vm1, %v361_v47 }
 0x290   :  { %886 = vmatpush.xpose.msk.msra.mxu0 %vm76_vm1, %v493_v46 }
 0x293   :  { %v491_v48 = vpop.permute.xlu1 %490 }
 0x297   :  { %887 = vmatmul.msk.f32.vlgmr.msra.gmra.mxu0 %vm76_vm1, %v491_v48 }
 0x2fa   :  { %v1133_v49 = vpop.f32.mrf.mxu1 }
 0x302   :  { %v227_v51 = vpop.f32.mrf.mxu1 }
 0x303   :  { %v228_v52 = vadd.f32 %v918_v23, %v227_v51 }
 0x305   :  { %v258_v54 = vsel %vm76_vm1, %v228_v52, -inf }
 0x306   :  { %259 = vmax.xlane.f32.xlu1 %v258_v54 }
 0x30c   :  { %v385_v60 = vpop.f32.mrf.mxu0 }
 0x30d   :  { %v386_v61 = vadd.f32 %v919_v27, %v385_v60 }
 0x30e   :  { %519 = vmax.xlane.f32.xlu1 %v518_v62 }
 0x30f   :  { %v391_v63 = vsel %vm76_vm1, %v386_v61, -inf }
 0x310   :  { %392 = vmax.xlane.f32.xlu0 %v391_v63 }
 0x314   :  { %v515_v7 = vpop.f32.mrf.mxu0 }
 0x315   :  { %v516_v8 = vadd.f32 %v919_v27, %v515_v7 }
 0x316   :  { %144 = vadd.xlane.f32.xlu1 %v143_v10 }
 0x317   :  { %v521_v12 = vsel %vm76_vm1, %v516_v8, -inf }
 0x318   :  { %522 = vmax.xlane.f32.xlu2 %v521_v12 }
 0x31e   :  { %401 = vadd.xlane.f32.xlu1 %v400_v15  ;;  %v627_v15 = vld [vmem:[%s1262_s3 + $0x18] sm:$0xff] }
 0x31f   :  { %647 = vmatpush.msra.mxu2 %v627_v15  ;;  %v756_v15 = vld [vmem:[%s1264_s5 + $0x18] sm:$0xff] }
 0x324   :  { %914 = vrot.lane.b32.xlu0 %v913_v17, %s996_s1  ;;  %v625_v17 = vld [vmem:[%s1262_s3 + $0x8] sm:$0xff] }
 0x326   :  { %274 = vadd.xlane.f32.xlu1 %v273_v18  ;;  %v624_v18 = vld [vmem:[%s1262_s3] sm:$0xff] }
 0x32c   :  { %540 = vrot.lane.b32.xlu0 %v1077_v9, %s997_s24 }
 0x330   :  { %176 = vrot.lane.b32.xlu2 %v1082_v11, %s988_s14 }
 0x338   :  { %410 = vrot.lane.b32.xlu2 %v1077_v9, %s998_s25 }
 0x379   :  { %v260_v19 = vpop.xlane.xlu1 %259 }
 0x37a   :  { %v264_v20 = vsub.f32 %v228_v52, %v260_v19 }
 0x37c   :  { %v266_v21 = vmul.f32 1.442695, %v264_v20 }
 0x37e   :  { %930 = vpow2.f32 %v266_v21 }
 0x381   :  { %v520_v22 = vpop.xlane.xlu1 %519 }
 0x382   :  { %v524_v23 = vsub.f32 %v488_v57, %v520_v22 }
 0x383   :  { %v393_v24 = vpop.xlane.xlu0 %392 }
 0x384   :  { %v931_v25 = vpop.eup %930  ;;  %v526_v26 = vmul.f32 1.442695, %v524_v23  ;;  %v395_v27 = vsub.f32 %v386_v61, %v393_v24 }
 0x385   :  { %v270_v28 = vsel %vm76_vm1, %v931_v25, 0.0 }
 0x386   :  { %932 = vpow2.f32 %v526_v26  ;;  %271 = vadd.xlane.f32.xlu0 %v270_v28  ;;  %v398_v29 = vmul.f32 1.442695, %v395_v27 }
 0x389   :  { %v145_v30 = vpop.xlane.xlu1 %144 }
 0x38a   :  { %934 = vrcp.f32 %v145_v30 }
 0x38b   :  { %v523_v31 = vpop.xlane.xlu2 %522  ;;  %936 = vpow2.f32 %v398_v29 }
 0x38c   :  { %v933_v32 = vpop.eup %932  ;;  %v525_v9 = vsub.f32 %v516_v8, %v523_v31  ;;  %v628_v31 = vperm.slane %v1074_v6, 2 }
 0x38d   :  { %v530_v33 = vsel %vm76_vm1, %v933_v32, 0.0 }
 0x38e   :  { %v528_v34 = vmul.f32 1.442695, %v525_v9  ;;  %531 = vadd.xlane.f32.xlu1 %v530_v33 }
 0x390   :  { %v935_v35 = vpop.eup %934  ;;  %938 = vpow2.f32 %v528_v34 }
 0x391   :  { %v402_v36 = vpop.xlane.xlu1 %401  ;;  %v937_v37 = vpop.eup %936  ;;  %v149_v39 = vmul.f32 %v935_v35, %v925_v2 }
 0x392   :  { %v403_v40 = vsel %vm76_vm1, %v937_v37, 0.0 }
 0x393   :  { %v177_v38 = vpop.permute.xlu2 %176 }
 0x394   :  { %197 = vmatpush.msra.mxu3 %v177_v38  ;;  %v1002_v38 = vmov 32.0  }
 0x395   :  { %871 = vmatmul.msk.f32.vlgmr.msra.gmra.mxu3 %vm76_vm1, %v149_v39 }
 0x396   :  { %v939_v41 = vpop.eup %938  ;;  %404 = vadd.xlane.f32.xlu1 %v403_v40  ;;  %v915_v42 = vpop.permute.xlu0 %914 }
 0x397   :  { %v917_v43 = vunpack.i.h.bf16 %v915_v42  ;;  %v533_v44 = vsel %vm76_vm1, %v939_v41, 0.0  ;;  %v916_v45 = vunpack.i.l.bf16 %v915_v42 }
 0x398   :  { %534 = vadd.xlane.f32.xlu2 %v533_v44 }
 0x399   :  { %v275_v46 = vpop.xlane.xlu1 %274  ;;  %301 = vmatpush.msrb.mxu3 %v916_v45  ;;  %327 = vmatpush.msrb.mxu1 %v917_v43 }
 0x39a   :  { %940 = vrcp.f32 %v275_v46  ;;  %566 = vrot.lane.b32.xlu0 %v1082_v11, %s997_s24 }
 0x39b   :  { %v411_v47 = vpop.permute.xlu2 %410 }
 0x39c   :  { %431 = vmatpush.msra.mxu3 %v411_v47 }
 0x39e   :  { %v541_v51 = vpop.permute.xlu0 %540 }
 0x3a0   :  { %v941_v48 = vpop.eup %940 }
 0x3a1   :  { %v279_v50 = vmul.f32 %v941_v48, %v929_v16  ;;  %v626_v16 = vld [vmem:[%s1262_s3 + $0x10] sm:$0xff]  ;;  %s1004_s3 = smov 128  }
 0x3a2   :  { %648 = vmatpush.msra.mxu2 %v626_v16 }
 0x3a3   :  { %877 = vmatmul.msk.f32.vlgmr.msrb.gmra.mxu1 %vm76_vm1, %v279_v50 }
 0x3a4   :  { %649 = vmatpush.msra.mxu2 %v625_v17 }
 0x3a6   :  { %650 = vmatpush.msra.mxu2 %v624_v18  ;;  %v714_v18 = vperm.slane %v1074_v6, 4 }
 0x3af   :  { %436 = vrot.lane.b32.xlu1 %v1082_v11, %s998_s25 }
 0x3f9   :  { %v272_v52 = vpop.xlane.xlu0 %271 }
 0x3fa   :  { %942 = vrcp.f32 %v272_v52 }
 0x3fb   :  { %944 = vrcp.f32 %v402_v36 }
 0x400   :  { %v943_v53 = vpop.eup %942 }
 0x401   :  { %v278_v54 = vmul.f32 %v943_v53, %v931_v25  ;;  %v532_v55 = vpop.xlane.xlu1 %531  ;;  %v945_v56 = vpop.eup %944 }
 0x402   :  { %946 = vrcp.f32 %v532_v55  ;;  %v408_v57 = vmul.f32 %v945_v56, %v1140_v14  ;;  %v719_v55 = vld [vmem:[%s1263_s4 + $0x10] sm:$0xff]  ;;  %v718_v56 = vld [vmem:[%s1263_s4 + $0x8] sm:$0xff] }
 0x403   :  { %876 = vmatmul.msk.f32.vlgmr.msrb.gmra.mxu3 %vm76_vm1, %v278_v54  ;;  %v720_v54 = vld [vmem:[%s1263_s4 + $0x18] sm:$0xff] }
 0x404   :  { %561 = vmatpush.msrb.mxu3 %v541_v51  ;;  %740 = vmatpush.msrb.mxu0 %v720_v54 }
 0x406   :  { %741 = vmatpush.msrb.mxu0 %v719_v55 }
 0x408   :  { %v947_v58 = vpop.eup %946  ;;  %742 = vmatpush.msrb.mxu0 %v718_v56 }
 0x409   :  { %v538_v59 = vmul.f32 %v947_v58, %v933_v32  ;;  %v405_v11 = vpop.xlane.xlu1 %404 }
 0x40a   :  { %948 = vrcp.f32 %v405_v11 }
 0x40b   :  { %882 = vmatmul.msk.f32.vlgmr.msra.gmra.mxu3 %vm76_vm1, %v408_v57  ;;  %v535_v60 = vpop.xlane.xlu2 %534  ;;  %v717_v57 = vld [vmem:[%s1263_s4] sm:$0xff] }
 0x40c   :  { %950 = vrcp.f32 %v535_v60  ;;  %v567_v1 = vpop.permute.xlu0 %566  ;;  %743 = vmatpush.msrb.mxu0 %v717_v57 }
 0x40d   :  { %952 = vrcp.f32 %v1002_v38 }
 0x410   :  { %v949_v61 = vpop.eup %948 }
 0x411   :  { %v409_v63 = vmul.f32 %v949_v61, %v937_v37 }
 0x412   :  { %v951_v2 = vpop.eup %950 }
 0x413   :  { %888 = vmatmul.msk.f32.vlgmr.msrb.gmra.mxu3 %vm76_vm1, %v538_v59  ;;  %v539_v3 = vmul.f32 %v951_v2, %v939_v41  ;;  %v953_v39 = vpop.eup %952  ;;  %v758_v2 = vld [vmem:[%s1264_s5 + $0x28] sm:$0xff] }
 0x414   :  { %v667_v40 = vmul.f32 32.0, %v953_v39  ;;  %vm671_vm4 = vweird.f32 %v953_v39 }
 0x416   :  { %v668_v41 = vsub.f32 1.0, %v667_v40 }
 0x418   :  { %v199_v7 = vpop.f32.mrf.mxu3  ;;  %v669_v42 = vmul.f32 %v953_v39, %v668_v41 }
 0x41a   :  { %v670_v43 = vadd.f32 %v953_v39, %v669_v42 }
 0x41c   :  { %v1193_v44 = vsel %vm671_vm4, %v953_v39, %v670_v43  ;;  %v761_v39 = vperm.slane %v1074_v6, 5 }
 0x420   :  { %v329_v62 = vpop.f32.mrf.mxu1 }
 0x421   :  { %v437_v0 = vpop.permute.xlu1 %436  ;;  %596 = vrot.lane.b32.xlu1 %v329_v62, %s999_s26 }
 0x422   :  { %457 = vmatpush.msra.mxu1 %v437_v0  ;;  %v759_v0 = vld [vmem:[%s1264_s5 + $0x30] sm:$0xff] }
 0x423   :  { %883 = vmatmul.msk.f32.vlgmr.msra.gmra.mxu1 %vm76_vm1, %v409_v63  ;;  %v760_v63 = vld [vmem:[%s1264_s5 + $0x38] sm:$0xff] }
 0x424   :  { %587 = vmatpush.msrb.mxu1 %v567_v1  ;;  %777 = vmatpush.msra.mxu3 %v760_v63 }
 0x426   :  { %778 = vmatpush.msra.mxu3 %v759_v0 }
 0x428   :  { %779 = vmatpush.msra.mxu3 %v758_v2 }
 0x42b   :  { %889 = vmatmul.msk.f32.vlgmr.msrb.gmra.mxu1 %vm76_vm1, %v539_v3 }
 0x486   :  { %v303_v8 = vpop.f32.mrf.mxu3 }
 0x487   :  { %594 = vrot.lane.b32.xlu0 %v303_v8, %s999_s26 }
 0x48e   :  { %v433_v10 = vpop.f32.mrf.mxu3 }
 0x48f   :  { %602 = vrot.lane.b32.xlu0 %v433_v10, %s1000_s27  ;;  %v757_v10 = vld [vmem:[%s1264_s5 + $0x20] sm:$0xff] }
 0x490   :  { %780 = vmatpush.msra.mxu3 %v757_v10 }
 0x492   :  { %781 = vmatpush.msra.mxu3 %v756_v15 }
 0x493   :  { %v597_v25 = vpop.permute.xlu1 %596 }
 0x494   :  { %v617_v27 = vsel %vm76_vm1, %v199_v7, %v597_v25 }
 0x496   :  { %v563_v12 = vpop.f32.mrf.mxu3 }
 0x497   :  { %610 = vrot.lane.b32.xlu0 %v563_v12, %s1001_s28 }
 0x4a0   :  { %v459_v13 = vpop.f32.mrf.mxu1 }
 0x4a1   :  { %604 = vrot.lane.b32.xlu0 %v459_v13, %s1000_s27  ;;  %v711_v13 = vperm.slane %v1074_v6, 3 }
 0x4a8   :  { %v589_v14 = vpop.f32.mrf.mxu1 }
 0x4a9   :  { %612 = vrot.lane.b32.xlu1 %v589_v14, %s1001_s28 }
 0x4f9   :  { %v595_v19 = vpop.permute.xlu0 %594 }
 0x4fa   :  { %v616_v21 = vsel %vm76_vm1, %v1133_v49, %v595_v19 }
 0x501   :  { %v603_v20 = vpop.permute.xlu0 %602 }
 0x502   :  { %v619_v22 = vsel %vm618_vm2, %v616_v21, %v603_v20 }
 0x509   :  { %v611_v23 = vpop.permute.xlu0 %610 }
 0x50a   :  { %v622_v24 = vsel %vm621_vm3, %v619_v22, %v611_v23 }
 0x50b   :  { %890 = vmatmul.msk.f32.vlgmr.msra.gmra.mxu2 %vm37_vm0, %v622_v24 }
 0x513   :  { %v605_v26 = vpop.permute.xlu0 %604 }
 0x514   :  { %v620_v28 = vsel %vm618_vm2, %v617_v27, %v605_v26 }
 0x51b   :  { %v613_v29 = vpop.permute.xlu1 %612 }
 0x51c   :  { %v623_v30 = vsel %vm621_vm3, %v620_v28, %v613_v29 }
 0x51d   :  { %891 = vmatmul.msk.f32.gmra.mxu2 %vm37_vm0, %v623_v30 }
 0x58e   :  { %v652_v32 = vpop.f32.mrf.mxu2 }
 0x58f   :  { %v653_v9 = vadd.f32 %v652_v32, %v628_v31  ;;  %v754_v32 = vld [vmem:[%s1264_s5 + $0x8] sm:$0xff] }
 0x591   :  { %v658_v49 = vadd.f32 %v653_v9, %v1060_v4  ;;  %v753_v9 = vld [vmem:[%s1264_s5] sm:$0xff] }
 0x593   :  { %v660_v33 = vsel %vm37_vm0, %v658_v49, 0.0 }
 0x594   :  { %661 = vadd.xlane.f32.xlu2 %v660_v33 }
 0x5a0   :  { %v655_v34 = vpop.f32.mrf.mxu2 }
 0x5a1   :  { %v656_v35 = vadd.f32 %v655_v34, %v628_v31  ;;  %v755_v31 = vld [vmem:[%s1264_s5 + $0x10] sm:$0xff]  ;;  %s1003_s5 = smov [#allocation2]  }
 0x5a2   :  { %782 = vmatpush.msra.mxu3 %v755_v31  ;;  %s850_s10 = sshll.u32 %s1003_s5, 4  ;;  %s851_s10 = int_to_ptr.vmem [resolvable:$true] %s850_s10 }
 0x5a3   :  { %v659_v36 = vadd.f32 %v656_v35, %v1067_v5 }
 0x5a4   :  { %783 = vmatpush.msra.mxu3 %v754_v32 }
 0x5a5   :  { %v663_v37 = vsel %vm37_vm0, %v659_v36, 0.0 }
 0x5a6   :  { %664 = vadd.xlane.f32.xlu0 %v663_v37  ;;  %784 = vmatpush.msra.mxu3 %v753_v9 }
 0x607   :  { %v662_v4 = vpop.xlane.xlu2 %661 }
 0x608   :  { %v673_v45 = vmul.f32 %v1193_v44, %v662_v4 }
 0x60a   :  { %v675_v46 = vsub.f32 %v658_v49, %v673_v45  ;;  %v721_v49 = vperm.slane %v1074_v6, 1 }
 0x60c   :  { %v677_v47 = vmul.f32 %v675_v46, %v675_v46 }
 0x60e   :  { %v679_v5 = vsel %vm37_vm0, %v677_v47, 0.0 }
 0x60f   :  { %680 = vadd.xlane.f32.xlu1 %v679_v5 }
 0x619   :  { %v665_v48 = vpop.xlane.xlu0 %664 }
 0x61a   :  { %v674_v50 = vmul.f32 %v1193_v44, %v665_v48 }
 0x61c   :  { %v676_v51 = vsub.f32 %v659_v36, %v674_v50 }
 0x61e   :  { %v678_v52 = vmul.f32 %v676_v51, %v676_v51 }
 0x620   :  { %v682_v53 = vsel %vm37_vm0, %v678_v52, 0.0 }
 0x621   :  { %683 = vadd.xlane.f32.xlu2 %v682_v53 }
 0x682   :  { %v681_v58 = vpop.xlane.xlu1 %680 }
 0x683   :  { %v685_v59 = vmul.f32 %v681_v58, %v1193_v44 }
 0x685   :  { %v687_v11 = vadd.f32 1e-05, %v685_v59 }
 0x687   :  { %954 = vrsqrt.f32 %v687_v11  ;;  %vm695_vm6 = vweird.f32 %v687_v11 }
 0x68d   :  { %v955_v60 = vpop.eup %954 }
 0x68e   :  { %v690_v61 = vmul.f32 %v955_v60, %v687_v11  ;;  %vm696_vm5 = vweird.f32 %v955_v60 }
 0x68f   :  { %vm697_vm7 = vmor %vm695_vm6, %vm696_vm5 }
 0x690   :  { %v691_v62 = vmul.f32 %v955_v60, %v690_v61 }
 0x692   :  { %v692_v1 = vmul.f32 0.5, %v691_v62 }
 0x694   :  { %v693_v3 = vsub.f32 1.5, %v692_v1  ;;  %v684_v7 = vpop.xlane.xlu2 %683 }
 0x695   :  { %v686_v8 = vmul.f32 %v684_v7, %v1193_v44  ;;  %v838_v7 = vperm.slane %v1074_v6, 6 }
 0x696   :  { %v694_v12 = vmul.f32 %v955_v60, %v693_v3 }
 0x697   :  { %v688_v14 = vadd.f32 1e-05, %v686_v8 }
 0x698   :  { %v698_v16 = vsel %vm697_vm7, %v955_v60, %v694_v12 }
 0x699   :  { %v709_v17 = vmul.f32 %v698_v16, %v675_v46  ;;  %956 = vrsqrt.f32 %v688_v14  ;;  %vm705_vm9 = vweird.f32 %v688_v14 }
 0x69b   :  { %v712_v19 = vmul.f32 %v711_v13, %v709_v17 }
 0x69d   :  { %v715_v20 = vadd.f32 %v714_v18, %v712_v19 }
 0x69f   :  { %v957_v21 = vpop.eup %956  ;;  %892 = vmatmul.msk.f32.vlgmr.msrb.gmra.mxu0 %vm37_vm0, %v715_v20 }
 0x6a0   :  { %v700_v22 = vmul.f32 %v957_v21, %v688_v14  ;;  %vm706_vm8 = vweird.f32 %v957_v21 }
 0x6a1   :  { %vm707_vm10 = vmor %vm705_vm9, %vm706_vm8 }
 0x6a2   :  { %v701_v23 = vmul.f32 %v957_v21, %v700_v22 }
 0x6a4   :  { %v702_v24 = vmul.f32 0.5, %v701_v23 }
 0x6a6   :  { %v703_v25 = vsub.f32 1.5, %v702_v24 }
 0x6a8   :  { %v704_v26 = vmul.f32 %v957_v21, %v703_v25 }
 0x6aa   :  { %v708_v27 = vsel %vm707_vm10, %v957_v21, %v704_v26 }
 0x6ab   :  { %v710_v28 = vmul.f32 %v708_v27, %v676_v51 }
 0x6ad   :  { %v713_v29 = vmul.f32 %v711_v13, %v710_v28  ;;  %v841_v13 = vperm.slane %v1074_v6, 7 }
 0x6af   :  { %v716_v30 = vadd.f32 %v714_v18, %v713_v29 }
 0x6b1   :  { %893 = vmatmul.msk.f32.gmra.mxu0 %vm37_vm0, %v716_v30 }
 0x71c   :  { %v745_v33 = vpop.f32.mrf.mxu0 }
 0x71d   :  { %v746_v34 = vadd.f32 %v745_v33, %v721_v49 }
 0x71f   :  { %v751_v35 = vmax.f32 %v746_v34, 0.0 }
 0x721   :  { %894 = vmatmul.msk.f32.vlgmr.msra.gmra.mxu3 %vm762_vm11, %v751_v35 }
 0x72e   :  { %v748_v36 = vpop.f32.mrf.mxu0 }
 0x72f   :  { %v749_v37 = vadd.f32 %v748_v36, %v721_v49 }
 0x731   :  { %v752_v38 = vmax.f32 %v749_v37, 0.0 }
 0x733   :  { %895 = vmatmul.msk.f32.gmra.mxu3 %vm762_vm11, %v752_v38 }
 0x7a4   :  { %v786_v40 = vpop.f32.mrf.mxu3 }
 0x7a5   :  { %v787_v41 = vadd.f32 %v786_v40, %v761_v39 }
 0x7a7   :  { %v792_v42 = vadd.f32 %v787_v41, %v715_v20 }
 0x7a9   :  { %v794_v43 = vsel %vm37_vm0, %v792_v42, 0.0 }
 0x7aa   :  { %795 = vadd.xlane.f32.xlu2 %v794_v43 }
 0x7b6   :  { %v789_v4 = vpop.f32.mrf.mxu3 }
 0x7b7   :  { %v790_v45 = vadd.f32 %v789_v4, %v761_v39 }
 0x7b9   :  { %v793_v46 = vadd.f32 %v790_v45, %v716_v30 }
 0x7bb   :  { %v797_v47 = vsel %vm37_vm0, %v793_v46, 0.0 }
 0x7bc   :  { %798 = vadd.xlane.f32.xlu2 %v797_v47 }
 0x81d   :  { %v796_v5 = vpop.xlane.xlu2 %795 }
 0x81e   :  { %v800_v48 = vmul.f32 %v796_v5, %v1193_v44 }
 0x820   :  { %v802_v50 = vsub.f32 %v792_v42, %v800_v48 }
 0x822   :  { %v804_v51 = vmul.f32 %v802_v50, %v802_v50 }
 0x824   :  { %v806_v52 = vsel %vm37_vm0, %v804_v51, 0.0 }
 0x825   :  { %807 = vadd.xlane.f32.xlu2 %v806_v52 }
 0x82f   :  { %v799_v53 = vpop.xlane.xlu2 %798 }
 0x830   :  { %v801_v54 = vmul.f32 %v799_v53, %v1193_v44 }
 0x832   :  { %v803_v55 = vsub.f32 %v793_v46, %v801_v54 }
 0x834   :  { %v805_v56 = vmul.f32 %v803_v55, %v803_v55 }
 0x836   :  { %v809_v57 = vsel %vm37_vm0, %v805_v56, 0.0 }
 0x837   :  { %810 = vadd.xlane.f32.xlu2 %v809_v57 }
 0x898   :  { %v808_v58 = vpop.xlane.xlu2 %807 }
 0x899   :  { %v812_v59 = vmul.f32 %v808_v58, %v1193_v44 }
 0x89b   :  { %v814_v11 = vadd.f32 1e-05, %v812_v59 }
 0x89d   :  { %958 = vrsqrt.f32 %v814_v11  ;;  %vm822_vm13 = vweird.f32 %v814_v11 }
 0x8a3   :  { %v959_v60 = vpop.eup %958 }
 0x8a4   :  { %v817_v61 = vmul.f32 %v959_v60, %v814_v11  ;;  %vm823_vm12 = vweird.f32 %v959_v60 }
 0x8a5   :  { %vm824_vm14 = vmor %vm822_vm13, %vm823_vm12 }
 0x8a6   :  { %v818_v62 = vmul.f32 %v959_v60, %v817_v61 }
 0x8a8   :  { %v819_v63 = vmul.f32 0.5, %v818_v62 }
 0x8aa   :  { %v820_v0 = vsub.f32 1.5, %v819_v63  ;;  %v811_v1 = vpop.xlane.xlu2 %810 }
 0x8ab   :  { %v813_v2 = vmul.f32 %v811_v1, %v1193_v44 }
 0x8ac   :  { %v821_v3 = vmul.f32 %v959_v60, %v820_v0 }
 0x8ad   :  { %v815_v8 = vadd.f32 1e-05, %v813_v2 }
 0x8ae   :  { %v825_v10 = vsel %vm824_vm14, %v959_v60, %v821_v3 }
 0x8af   :  { %v836_v12 = vmul.f32 %v825_v10, %v802_v50  ;;  %960 = vrsqrt.f32 %v815_v8  ;;  %vm832_vm1 = vweird.f32 %v815_v8 }
 0x8b1   :  { %v839_v14 = vmul.f32 %v838_v7, %v836_v12 }
 0x8b3   :  { %v842_v15 = vadd.f32 %v841_v13, %v839_v14 }
 0x8b5   :  { %v961_v16 = vpop.eup %960  ;;  %844 = vst.msk [vmem:[#allocation2] sm:$0xff] %vm37_vm0, %v842_v15 }
 0x8b6   :  { %v827_v17 = vmul.f32 %v961_v16, %v815_v8  ;;  %vm833_vm15 = vweird.f32 %v961_v16 }
 0x8b7   :  { %vm834_vm2 = vmor %vm832_vm1, %vm833_vm15 }
 0x8b8   :  { %v828_v18 = vmul.f32 %v961_v16, %v827_v17 }
 0x8ba   :  { %v829_v19 = vmul.f32 0.5, %v828_v18 }
 0x8bc   :  { %v830_v44 = vsub.f32 1.5, %v829_v19 }
 0x8be   :  { %v831_v20 = vmul.f32 %v961_v16, %v830_v44 }
 0x8c0   :  { %v835_v21 = vsel %vm834_vm2, %v961_v16, %v831_v20 }
 0x8c1   :  { %v837_v22 = vmul.f32 %v835_v21, %v803_v55 }
 0x8c3   :  { %v840_v6 = vmul.f32 %v838_v7, %v837_v22 }
 0x8c5   :  { %v843_v23 = vadd.f32 %v841_v13, %v840_v6 }
 0x8c7   :  { %845 = vst.msk [vmem:[#allocation2 + $0x8] sm:$0xff] %vm37_vm0, %v843_v23 }
 0x8c8   :  { %858 = dma.vmem_to_hbm [thread:$0]  %s851_s10, 256, %s853_s2, [#allocation3], %s1004_s3, %s1004_s3, %s999_s26  }
 0x8c9   :  { %986 = dma.done.wait [#allocation3], 256  }
 0x8ca   :  { %987 = vsyncadd [#allocation3], 4294967040 }
 0x8cb   :  { %863 = vsyncpa [#allocation3], 1 }

// kernel: encoder_forward.2
= control target key start
LH: loop header
LB: loop body
LE: loop exit
PB: predicated region body
PF: predicated region fallthrough
CT: control target
= control target key end

     0   :  { %vm36_vm0 = vcmask 261120   ;;  %s945_s14 = smov 64   ;;  %s946_s15 = smov 96   ;;  %vm75_vm1 = vcmask 64512   ;;  %vm617_vm2 = vcmask 130048   ;;  %vm620_vm3 = vcmask 195584   ;;  %s1214_s2 = inlined_call_operand.vmem [shape: f32[32,96], index: 2, kind: input, shape index: {}]   ;;  %s1215_s0 = inlined_call_operand.vmem [shape: f32[2,8,32], index: 0, kind: input, shape index: {}]   ;;  %s1216_s6 = inlined_call_operand.vmem [shape: f32[8,96], index: 6, kind: input, shape index: {}]   ;;  %s1217_s1 = inlined_call_operand.vmem [shape: f32[2,1,8], index: 1, kind: input, shape index: {}]   ;;  %s1218_s3 = inlined_call_operand.vmem [shape: f32[32,32], index: 3, kind: input, shape index: {}]   ;;  %s1219_s4 = inlined_call_operand.vmem [shape: f32[32,64], index: 4, kind: input, shape index: {}]   ;;  %s1220_s5 = inlined_call_operand.vmem [shape: f32[64,32], index: 5, kind: input, shape index: {}]   ;;  %s1221_s7 = inlined_call_operand.vmem [shape: f32[2,8,32], index: 7, kind: output, shape index: {}]  }
   0x1   :  { %v34_v0 = vld [vmem:[%s1214_s2 + $0x18] sm:$0xff]  ;;  %v33_v1 = vld [vmem:[%s1214_s2 + $0x10] sm:$0xff]  ;;  %v32_v2 = vld [vmem:[%s1214_s2 + $0x8] sm:$0xff]  ;;  %s949_s16 = smov 72   ;;  %s950_s17 = smov 80   ;;  %vm761_vm11 = vcmask 523264  }
   0x2   :  { %55 = vmatpush.msra.mxu0 %v34_v0  ;;  %v31_v3 = vld [vmem:[%s1214_s2] sm:$0xff]  ;;  %v1022_v5 = vld [vmem:[%s1215_s0 + $0x8] sm:$0xff]  ;;  %s951_s18 = smov 112   ;;  %s952_s19 = smov 104  }
   0x3   :  { %v1015_v4 = vld [vmem:[%s1215_s0] sm:$0xff]  ;;  %s947_s0 = smov 88   ;;  %s954_s24 = smov 40  }
   0x4   :  { %56 = vmatpush.msra.mxu0 %v33_v1  ;;  %v1029_v6 = vld [vmem:[%s1216_s6] sm:$0xff]  ;;  %s948_s6 = smov 120   ;;  %s955_s25 = smov 48  }
   0x5   :  { %v35_v7 = vperm.slane %v1029_v6, 0  ;;  %v901_v23 = vld [vmem:[%s1217_s1] ss:$0 sm:$0xff]  ;;  %v902_v27 = vld [vmem:[%s1217_s1 + $0x1] ss:$0 sm:$0xff]  ;;  %s953_s1 = smov 56  }
   0x6   :  { %57 = vmatpush.msra.mxu0 %v32_v2  ;;  %s956_s26 = smov 8   ;;  %s957_s27 = smov 16  }
   0x7   :  { %s958_s28 = smov 24  }
   0x8   :  { %58 = vmatpush.msra.mxu0 %v31_v3 }
   0x9   :  { %849 = vmatmul.msk.f32.vlgmr.msra.gmra.mxu0 %vm36_vm0, %v1015_v4 }
  0x11   :  { %850 = vmatmul.msk.f32.gmra.mxu0 %vm36_vm0, %v1022_v5 }
  0x86   :  { %v60_v8 = vpop.f32.mrf.mxu0 }
  0x87   :  { %v1032_v9 = vadd.f32 %v60_v8, %v35_v7 }
  0x89   :  { %149 = vrot.lane.b32.xlu2 %v1032_v9, %s945_s14  ;;  %73 = vrot.lane.b32.xlu0 %v1032_v9, %s946_s15 }
  0x8e   :  { %v63_v10 = vpop.f32.mrf.mxu0 }
  0x8f   :  { %v1037_v11 = vadd.f32 %v63_v10, %v35_v7 }
  0x91   :  { %101 = vrot.lane.b32.xlu1 %v1037_v11, %s946_s15  ;;  %231 = vrot.lane.b32.xlu2 %v1037_v11, %s947_s0 }
  0x99   :  { %201 = vrot.lane.b32.xlu1 %v1032_v9, %s948_s6  ;;  %229 = vrot.lane.b32.xlu2 %v1037_v11, %s948_s6 }
  0xa1   :  { %463 = vrot.lane.b32.xlu1 %v1032_v9, %s949_s16  ;;  %203 = vrot.lane.b32.xlu2 %v1032_v9, %s947_s0 }
  0xa9   :  { %333 = vrot.lane.b32.xlu2 %v1032_v9, %s950_s17 }
  0xb1   :  { %331 = vrot.lane.b32.xlu2 %v1032_v9, %s951_s18 }
  0xb9   :  { %461 = vrot.lane.b32.xlu2 %v1032_v9, %s952_s19 }
  0xc1   :  { %491 = vrot.lane.b32.xlu2 %v1037_v11, %s949_s16 }
  0xe3   :  { %v150_v12 = vpop.permute.xlu2 %149 }
  0xeb   :  { %v232_v13 = vpop.permute.xlu2 %231 }
  0xf3   :  { %v230_v14 = vpop.permute.xlu2 %229 }
  0xfb   :  { %v74_v15 = vpop.permute.xlu0 %73  ;;  %v204_v16 = vpop.permute.xlu2 %203 }
  0xfc   :  { %851 = vmatpush.xpose.msk.msra.mxu1 %vm75_vm1, %v74_v15 }
  0xff   :  { %852 = vmatmul.msk.f32.vlgmr.msra.gmra.mxu1 %vm75_vm1, %v1032_v9 }
 0x100   :  { %170 = vmatpush.msrb.mxu1 %v150_v12 }
 0x102   :  { %857 = vmatpush.xpose.msk.msra.mxu1 %vm75_vm1, %v204_v16 }
 0x103   :  { %v102_v17 = vpop.permute.xlu1 %101  ;;  %v334_v18 = vpop.permute.xlu2 %333 }
 0x104   :  { %853 = vmatpush.xpose.msk.msra.mxu2 %vm75_vm1, %v102_v17  ;;  %v896_v17 = vpack.i.bf16 %v1037_v11, %v1032_v9 }
 0x107   :  { %854 = vmatmul.msk.f32.vlgmr.msra.gmra.mxu2 %vm75_vm1, %v1037_v11 }
 0x108   :  { %859 = vmatpush.xpose.msk.msrb.mxu2 %vm75_vm1, %v232_v13 }
 0x10b   :  { %v202_v19 = vpop.permute.xlu1 %201  ;;  %v332_v21 = vpop.permute.xlu2 %331 }
 0x10c   :  { %863 = vmatpush.xpose.msk.msra.mxu2 %vm75_vm1, %v334_v18 }
 0x10f   :  { %860 = vmatmul.msk.f32.vlgmr.msrb.gmra.mxu2 %vm75_vm1, %v230_v14 }
 0x113   :  { %v464_v20 = vpop.permute.xlu1 %463  ;;  %v462_v22 = vpop.permute.xlu2 %461 }
 0x114   :  { %869 = vmatpush.xpose.msk.msrb.mxu2 %vm75_vm1, %v464_v20 }
 0x117   :  { %864 = vmatmul.msk.f32.vlgmr.msra.gmra.mxu2 %vm75_vm1, %v332_v21 }
 0x11b   :  { %v492_v46 = vpop.permute.xlu2 %491 }
 0x11f   :  { %870 = vmatmul.msk.f32.vlgmr.msrb.gmra.mxu2 %vm75_vm1, %v462_v22 }
 0x17c   :  { %v97_v24 = vpop.f32.mrf.mxu1 }
 0x17d   :  { %v98_v25 = vadd.f32 %v901_v23, %v97_v24 }
 0x17f   :  { %v127_v26 = vsel %vm75_vm1, %v98_v25, -inf }
 0x180   :  { %128 = vmax.xlane.f32.xlu0 %v127_v26 }
 0x18a   :  { %v124_v28 = vpop.f32.mrf.mxu2 }
 0x18b   :  { %v125_v29 = vadd.f32 %v902_v27, %v124_v28 }
 0x18d   :  { %v130_v30 = vsel %vm75_vm1, %v125_v29, -inf }
 0x18e   :  { %131 = vmax.xlane.f32.xlu2 %v130_v30 }
 0x192   :  { %v254_v31 = vpop.f32.mrf.mxu2 }
 0x193   :  { %v255_v40 = vadd.f32 %v902_v27, %v254_v31 }
 0x194   :  { %359 = vrot.lane.b32.xlu0 %v1037_v11, %s951_s18 }
 0x195   :  { %v260_v41 = vsel %vm75_vm1, %v255_v40, -inf }
 0x196   :  { %261 = vmax.xlane.f32.xlu2 %v260_v41 }
 0x19a   :  { %v356_v32 = vpop.f32.mrf.mxu2 }
 0x19b   :  { %v357_v33 = vadd.f32 %v901_v23, %v356_v32 }
 0x19d   :  { %v387_v34 = vsel %vm75_vm1, %v357_v33, -inf }
 0x1a2   :  { %v486_v55 = vpop.f32.mrf.mxu2 }
 0x1a3   :  { %v487_v57 = vadd.f32 %v901_v23, %v486_v55 }
 0x1a5   :  { %v517_v62 = vsel %vm75_vm1, %v487_v57, -inf }
 0x1be   :  { %388 = vmax.xlane.f32.xlu0 %v387_v34 }
 0x1f3   :  { %v129_v35 = vpop.xlane.xlu0 %128 }
 0x1f4   :  { %v133_v36 = vsub.f32 %v98_v25, %v129_v35 }
 0x1f6   :  { %v135_v37 = vmul.f32 1.442695, %v133_v36 }
 0x1f8   :  { %903 = vpow2.f32 %v135_v37 }
 0x1fe   :  { %v904_v38 = vpop.eup %903 }
 0x1ff   :  { %v139_v39 = vsel %vm75_vm1, %v904_v38, 0.0 }
 0x200   :  { %140 = vadd.xlane.f32.xlu1 %v139_v39 }
 0x201   :  { %v132_v50 = vpop.xlane.xlu2 %131 }
 0x202   :  { %v134_v53 = vsub.f32 %v125_v29, %v132_v50 }
 0x204   :  { %v137_v56 = vmul.f32 1.442695, %v134_v53 }
 0x206   :  { %v360_v47 = vpop.permute.xlu0 %359 }
 0x209   :  { %v262_v1 = vpop.xlane.xlu2 %261 }
 0x20a   :  { %v264_v3 = vsub.f32 %v255_v40, %v262_v1 }
 0x20c   :  { %v267_v13 = vmul.f32 1.442695, %v264_v3 }
 0x219   :  { %361 = vrot.lane.b32.xlu1 %v1037_v11, %s950_s17 }
 0x221   :  { %489 = vrot.lane.b32.xlu1 %v1037_v11, %s952_s19 }
 0x231   :  { %v389_v58 = vpop.xlane.xlu0 %388 }
 0x232   :  { %v393_v59 = vsub.f32 %v357_v33, %v389_v58 }
 0x234   :  { %v395_v0 = vmul.f32 1.442695, %v393_v59 }
 0x273   :  { %v141_v42 = vpop.xlane.xlu1 %140 }
 0x274   :  { %905 = vrcp.f32 %v141_v42 }
 0x275   :  { %907 = vpow2.f32 %v137_v56 }
 0x276   :  { %909 = vpow2.f32 %v395_v0 }
 0x277   :  { %911 = vpow2.f32 %v267_v13 }
 0x27a   :  { %v906_v43 = vpop.eup %905 }
 0x27b   :  { %v147_v44 = vmul.f32 %v906_v43, %v904_v38  ;;  %v908_v2 = vpop.eup %907 }
 0x27c   :  { %v142_v10 = vsel %vm75_vm1, %v908_v2, 0.0  ;;  %v1095_v14 = vpop.eup %909 }
 0x27d   :  { %855 = vmatmul.msk.f32.vlgmr.msrb.gmra.mxu1 %vm75_vm1, %v147_v44  ;;  %v399_v15 = vsel %vm75_vm1, %v1095_v14, 0.0  ;;  %v912_v16 = vpop.eup %911 }
 0x27e   :  { %v272_v18 = vsel %vm75_vm1, %v912_v16, 0.0 }
 0x285   :  { %858 = vmatmul.msk.f32.vlgmr.msra.gmra.mxu1 %vm75_vm1, %v202_v19 }
 0x28b   :  { %v362_v45 = vpop.permute.xlu1 %361 }
 0x28c   :  { %865 = vmatpush.xpose.msk.msrb.mxu0 %vm75_vm1, %v362_v45 }
 0x28f   :  { %866 = vmatmul.msk.f32.vlgmr.msrb.gmra.mxu0 %vm75_vm1, %v360_v47 }
 0x290   :  { %871 = vmatpush.xpose.msk.msra.mxu0 %vm75_vm1, %v492_v46 }
 0x293   :  { %v490_v48 = vpop.permute.xlu1 %489 }
 0x297   :  { %872 = vmatmul.msk.f32.vlgmr.msra.gmra.mxu0 %vm75_vm1, %v490_v48 }
 0x2fa   :  { %v1088_v49 = vpop.f32.mrf.mxu1 }
 0x302   :  { %v226_v51 = vpop.f32.mrf.mxu1 }
 0x303   :  { %v227_v52 = vadd.f32 %v901_v23, %v226_v51 }
 0x305   :  { %v257_v54 = vsel %vm75_vm1, %v227_v52, -inf }
 0x306   :  { %258 = vmax.xlane.f32.xlu1 %v257_v54 }
 0x30c   :  { %v384_v60 = vpop.f32.mrf.mxu0 }
 0x30d   :  { %v385_v61 = vadd.f32 %v902_v27, %v384_v60 }
 0x30e   :  { %518 = vmax.xlane.f32.xlu1 %v517_v62 }
 0x30f   :  { %v390_v63 = vsel %vm75_vm1, %v385_v61, -inf }
 0x310   :  { %391 = vmax.xlane.f32.xlu0 %v390_v63 }
 0x314   :  { %v514_v7 = vpop.f32.mrf.mxu0 }
 0x315   :  { %v515_v8 = vadd.f32 %v902_v27, %v514_v7 }
 0x316   :  { %143 = vadd.xlane.f32.xlu1 %v142_v10 }
 0x317   :  { %v520_v12 = vsel %vm75_vm1, %v515_v8, -inf }
 0x318   :  { %521 = vmax.xlane.f32.xlu2 %v520_v12 }
 0x31e   :  { %400 = vadd.xlane.f32.xlu1 %v399_v15  ;;  %v626_v15 = vld [vmem:[%s1218_s3 + $0x18] sm:$0xff] }
 0x31f   :  { %646 = vmatpush.msra.mxu2 %v626_v15  ;;  %v755_v15 = vld [vmem:[%s1220_s5 + $0x18] sm:$0xff] }
 0x324   :  { %897 = vrot.lane.b32.xlu0 %v896_v17, %s953_s1  ;;  %v624_v17 = vld [vmem:[%s1218_s3 + $0x8] sm:$0xff] }
 0x326   :  { %273 = vadd.xlane.f32.xlu1 %v272_v18  ;;  %v623_v18 = vld [vmem:[%s1218_s3] sm:$0xff] }
 0x32c   :  { %539 = vrot.lane.b32.xlu0 %v1032_v9, %s954_s24 }
 0x330   :  { %175 = vrot.lane.b32.xlu2 %v1037_v11, %s945_s14 }
 0x338   :  { %409 = vrot.lane.b32.xlu2 %v1032_v9, %s955_s25 }
 0x379   :  { %v259_v19 = vpop.xlane.xlu1 %258 }
 0x37a   :  { %v263_v20 = vsub.f32 %v227_v52, %v259_v19 }
 0x37c   :  { %v265_v21 = vmul.f32 1.442695, %v263_v20 }
 0x37e   :  { %913 = vpow2.f32 %v265_v21 }
 0x381   :  { %v519_v22 = vpop.xlane.xlu1 %518 }
 0x382   :  { %v523_v23 = vsub.f32 %v487_v57, %v519_v22 }
 0x383   :  { %v392_v24 = vpop.xlane.xlu0 %391 }
 0x384   :  { %v914_v25 = vpop.eup %913  ;;  %v525_v26 = vmul.f32 1.442695, %v523_v23  ;;  %v394_v27 = vsub.f32 %v385_v61, %v392_v24 }
 0x385   :  { %v269_v28 = vsel %vm75_vm1, %v914_v25, 0.0 }
 0x386   :  { %915 = vpow2.f32 %v525_v26  ;;  %270 = vadd.xlane.f32.xlu0 %v269_v28  ;;  %v397_v29 = vmul.f32 1.442695, %v394_v27 }
 0x389   :  { %v144_v30 = vpop.xlane.xlu1 %143 }
 0x38a   :  { %917 = vrcp.f32 %v144_v30 }
 0x38b   :  { %v522_v31 = vpop.xlane.xlu2 %521  ;;  %919 = vpow2.f32 %v397_v29 }
 0x38c   :  { %v916_v32 = vpop.eup %915  ;;  %v524_v9 = vsub.f32 %v515_v8, %v522_v31  ;;  %v627_v31 = vperm.slane %v1029_v6, 2 }
 0x38d   :  { %v529_v33 = vsel %vm75_vm1, %v916_v32, 0.0 }
 0x38e   :  { %v527_v34 = vmul.f32 1.442695, %v524_v9  ;;  %530 = vadd.xlane.f32.xlu1 %v529_v33 }
 0x390   :  { %v918_v35 = vpop.eup %917  ;;  %921 = vpow2.f32 %v527_v34 }
 0x391   :  { %v401_v36 = vpop.xlane.xlu1 %400  ;;  %v920_v37 = vpop.eup %919  ;;  %v148_v39 = vmul.f32 %v918_v35, %v908_v2 }
 0x392   :  { %v402_v40 = vsel %vm75_vm1, %v920_v37, 0.0 }
 0x393   :  { %v176_v38 = vpop.permute.xlu2 %175 }
 0x394   :  { %196 = vmatpush.msra.mxu3 %v176_v38  ;;  %v959_v38 = vmov 32.0  }
 0x395   :  { %856 = vmatmul.msk.f32.vlgmr.msra.gmra.mxu3 %vm75_vm1, %v148_v39 }
 0x396   :  { %v922_v41 = vpop.eup %921  ;;  %403 = vadd.xlane.f32.xlu1 %v402_v40  ;;  %v898_v42 = vpop.permute.xlu0 %897 }
 0x397   :  { %v900_v43 = vunpack.i.h.bf16 %v898_v42  ;;  %v532_v44 = vsel %vm75_vm1, %v922_v41, 0.0  ;;  %v899_v45 = vunpack.i.l.bf16 %v898_v42 }
 0x398   :  { %533 = vadd.xlane.f32.xlu2 %v532_v44 }
 0x399   :  { %v274_v46 = vpop.xlane.xlu1 %273  ;;  %300 = vmatpush.msrb.mxu3 %v899_v45  ;;  %326 = vmatpush.msrb.mxu1 %v900_v43 }
 0x39a   :  { %923 = vrcp.f32 %v274_v46  ;;  %565 = vrot.lane.b32.xlu0 %v1037_v11, %s954_s24 }
 0x39b   :  { %v410_v47 = vpop.permute.xlu2 %409 }
 0x39c   :  { %430 = vmatpush.msra.mxu3 %v410_v47 }
 0x39e   :  { %v540_v51 = vpop.permute.xlu0 %539 }
 0x3a0   :  { %v924_v48 = vpop.eup %923 }
 0x3a1   :  { %v278_v50 = vmul.f32 %v924_v48, %v912_v16  ;;  %v625_v16 = vld [vmem:[%s1218_s3 + $0x10] sm:$0xff] }
 0x3a2   :  { %647 = vmatpush.msra.mxu2 %v625_v16 }
 0x3a3   :  { %862 = vmatmul.msk.f32.vlgmr.msrb.gmra.mxu1 %vm75_vm1, %v278_v50 }
 0x3a4   :  { %648 = vmatpush.msra.mxu2 %v624_v17 }
 0x3a6   :  { %649 = vmatpush.msra.mxu2 %v623_v18  ;;  %v713_v18 = vperm.slane %v1029_v6, 4 }
 0x3af   :  { %435 = vrot.lane.b32.xlu1 %v1037_v11, %s955_s25 }
 0x3f9   :  { %v271_v52 = vpop.xlane.xlu0 %270 }
 0x3fa   :  { %925 = vrcp.f32 %v271_v52 }
 0x3fb   :  { %927 = vrcp.f32 %v401_v36 }
 0x400   :  { %v926_v53 = vpop.eup %925 }
 0x401   :  { %v277_v54 = vmul.f32 %v926_v53, %v914_v25  ;;  %v531_v55 = vpop.xlane.xlu1 %530  ;;  %v928_v56 = vpop.eup %927 }
 0x402   :  { %929 = vrcp.f32 %v531_v55  ;;  %v407_v57 = vmul.f32 %v928_v56, %v1095_v14  ;;  %v718_v55 = vld [vmem:[%s1219_s4 + $0x10] sm:$0xff]  ;;  %v717_v56 = vld [vmem:[%s1219_s4 + $0x8] sm:$0xff] }
 0x403   :  { %861 = vmatmul.msk.f32.vlgmr.msrb.gmra.mxu3 %vm75_vm1, %v277_v54  ;;  %v719_v54 = vld [vmem:[%s1219_s4 + $0x18] sm:$0xff] }
 0x404   :  { %560 = vmatpush.msrb.mxu3 %v540_v51  ;;  %739 = vmatpush.msrb.mxu0 %v719_v54 }
 0x406   :  { %740 = vmatpush.msrb.mxu0 %v718_v55 }
 0x408   :  { %v930_v58 = vpop.eup %929  ;;  %741 = vmatpush.msrb.mxu0 %v717_v56 }
 0x409   :  { %v537_v59 = vmul.f32 %v930_v58, %v916_v32  ;;  %v404_v11 = vpop.xlane.xlu1 %403 }
 0x40a   :  { %931 = vrcp.f32 %v404_v11 }
 0x40b   :  { %867 = vmatmul.msk.f32.vlgmr.msra.gmra.mxu3 %vm75_vm1, %v407_v57  ;;  %v534_v60 = vpop.xlane.xlu2 %533  ;;  %v716_v57 = vld [vmem:[%s1219_s4] sm:$0xff] }
 0x40c   :  { %933 = vrcp.f32 %v534_v60  ;;  %v566_v1 = vpop.permute.xlu0 %565  ;;  %742 = vmatpush.msrb.mxu0 %v716_v57 }
 0x40d   :  { %935 = vrcp.f32 %v959_v38 }
 0x410   :  { %v932_v61 = vpop.eup %931 }
 0x411   :  { %v408_v63 = vmul.f32 %v932_v61, %v920_v37 }
 0x412   :  { %v934_v2 = vpop.eup %933 }
 0x413   :  { %873 = vmatmul.msk.f32.vlgmr.msrb.gmra.mxu3 %vm75_vm1, %v537_v59  ;;  %v538_v3 = vmul.f32 %v934_v2, %v922_v41  ;;  %v936_v39 = vpop.eup %935  ;;  %v757_v2 = vld [vmem:[%s1220_s5 + $0x28] sm:$0xff] }
 0x414   :  { %v666_v40 = vmul.f32 32.0, %v936_v39  ;;  %vm670_vm4 = vweird.f32 %v936_v39 }
 0x416   :  { %v667_v41 = vsub.f32 1.0, %v666_v40 }
 0x418   :  { %v198_v7 = vpop.f32.mrf.mxu3  ;;  %v668_v42 = vmul.f32 %v936_v39, %v667_v41 }
 0x41a   :  { %v669_v43 = vadd.f32 %v936_v39, %v668_v42 }
 0x41c   :  { %v1146_v44 = vsel %vm670_vm4, %v936_v39, %v669_v43  ;;  %v760_v39 = vperm.slane %v1029_v6, 5 }
 0x420   :  { %v328_v62 = vpop.f32.mrf.mxu1 }
 0x421   :  { %v436_v0 = vpop.permute.xlu1 %435  ;;  %595 = vrot.lane.b32.xlu1 %v328_v62, %s956_s26 }
 0x422   :  { %456 = vmatpush.msra.mxu1 %v436_v0  ;;  %v758_v0 = vld [vmem:[%s1220_s5 + $0x30] sm:$0xff] }
 0x423   :  { %868 = vmatmul.msk.f32.vlgmr.msra.gmra.mxu1 %vm75_vm1, %v408_v63  ;;  %v759_v63 = vld [vmem:[%s1220_s5 + $0x38] sm:$0xff] }
 0x424   :  { %586 = vmatpush.msrb.mxu1 %v566_v1  ;;  %776 = vmatpush.msra.mxu3 %v759_v63 }
 0x426   :  { %777 = vmatpush.msra.mxu3 %v758_v0 }
 0x428   :  { %778 = vmatpush.msra.mxu3 %v757_v2 }
 0x42b   :  { %874 = vmatmul.msk.f32.vlgmr.msrb.gmra.mxu1 %vm75_vm1, %v538_v3 }
 0x486   :  { %v302_v8 = vpop.f32.mrf.mxu3 }
 0x487   :  { %593 = vrot.lane.b32.xlu0 %v302_v8, %s956_s26 }
 0x48e   :  { %v432_v10 = vpop.f32.mrf.mxu3 }
 0x48f   :  { %601 = vrot.lane.b32.xlu0 %v432_v10, %s957_s27  ;;  %v756_v10 = vld [vmem:[%s1220_s5 + $0x20] sm:$0xff] }
 0x490   :  { %779 = vmatpush.msra.mxu3 %v756_v10 }
 0x492   :  { %780 = vmatpush.msra.mxu3 %v755_v15 }
 0x493   :  { %v596_v25 = vpop.permute.xlu1 %595 }
 0x494   :  { %v616_v27 = vsel %vm75_vm1, %v198_v7, %v596_v25 }
 0x496   :  { %v562_v12 = vpop.f32.mrf.mxu3 }
 0x497   :  { %609 = vrot.lane.b32.xlu0 %v562_v12, %s958_s28 }
 0x4a0   :  { %v458_v13 = vpop.f32.mrf.mxu1 }
 0x4a1   :  { %603 = vrot.lane.b32.xlu0 %v458_v13, %s957_s27  ;;  %v710_v13 = vperm.slane %v1029_v6, 3 }
 0x4a8   :  { %v588_v14 = vpop.f32.mrf.mxu1 }
 0x4a9   :  { %611 = vrot.lane.b32.xlu1 %v588_v14, %s958_s28 }
 0x4f9   :  { %v594_v19 = vpop.permute.xlu0 %593 }
 0x4fa   :  { %v615_v21 = vsel %vm75_vm1, %v1088_v49, %v594_v19 }
 0x501   :  { %v602_v20 = vpop.permute.xlu0 %601 }
 0x502   :  { %v618_v22 = vsel %vm617_vm2, %v615_v21, %v602_v20 }
 0x509   :  { %v610_v23 = vpop.permute.xlu0 %609 }
 0x50a   :  { %v621_v24 = vsel %vm620_vm3, %v618_v22, %v610_v23 }
 0x50b   :  { %875 = vmatmul.msk.f32.vlgmr.msra.gmra.mxu2 %vm36_vm0, %v621_v24 }
 0x513   :  { %v604_v26 = vpop.permute.xlu0 %603 }
 0x514   :  { %v619_v28 = vsel %vm617_vm2, %v616_v27, %v604_v26 }
 0x51b   :  { %v612_v29 = vpop.permute.xlu1 %611 }
 0x51c   :  { %v622_v30 = vsel %vm620_vm3, %v619_v28, %v612_v29 }
 0x51d   :  { %876 = vmatmul.msk.f32.gmra.mxu2 %vm36_vm0, %v622_v30 }
 0x58e   :  { %v651_v32 = vpop.f32.mrf.mxu2 }
 0x58f   :  { %v652_v9 = vadd.f32 %v651_v32, %v627_v31  ;;  %v753_v32 = vld [vmem:[%s1220_s5 + $0x8] sm:$0xff] }
 0x591   :  { %v657_v49 = vadd.f32 %v652_v9, %v1015_v4  ;;  %v752_v9 = vld [vmem:[%s1220_s5] sm:$0xff] }
 0x593   :  { %v659_v33 = vsel %vm36_vm0, %v657_v49, 0.0 }
 0x594   :  { %660 = vadd.xlane.f32.xlu2 %v659_v33 }
 0x5a0   :  { %v654_v34 = vpop.f32.mrf.mxu2 }
 0x5a1   :  { %v655_v35 = vadd.f32 %v654_v34, %v627_v31  ;;  %v754_v31 = vld [vmem:[%s1220_s5 + $0x10] sm:$0xff] }
 0x5a2   :  { %781 = vmatpush.msra.mxu3 %v754_v31 }
 0x5a3   :  { %v658_v36 = vadd.f32 %v655_v35, %v1022_v5 }
 0x5a4   :  { %782 = vmatpush.msra.mxu3 %v753_v32 }
 0x5a5   :  { %v662_v37 = vsel %vm36_vm0, %v658_v36, 0.0 }
 0x5a6   :  { %663 = vadd.xlane.f32.xlu0 %v662_v37  ;;  %783 = vmatpush.msra.mxu3 %v752_v9 }
 0x607   :  { %v661_v4 = vpop.xlane.xlu2 %660 }
 0x608   :  { %v672_v45 = vmul.f32 %v1146_v44, %v661_v4 }
 0x60a   :  { %v674_v46 = vsub.f32 %v657_v49, %v672_v45  ;;  %v720_v49 = vperm.slane %v1029_v6, 1 }
 0x60c   :  { %v676_v47 = vmul.f32 %v674_v46, %v674_v46 }
 0x60e   :  { %v678_v5 = vsel %vm36_vm0, %v676_v47, 0.0 }
 0x60f   :  { %679 = vadd.xlane.f32.xlu1 %v678_v5 }
 0x619   :  { %v664_v48 = vpop.xlane.xlu0 %663 }
 0x61a   :  { %v673_v50 = vmul.f32 %v1146_v44, %v664_v48 }
 0x61c   :  { %v675_v51 = vsub.f32 %v658_v36, %v673_v50 }
 0x61e   :  { %v677_v52 = vmul.f32 %v675_v51, %v675_v51 }
 0x620   :  { %v681_v53 = vsel %vm36_vm0, %v677_v52, 0.0 }
 0x621   :  { %682 = vadd.xlane.f32.xlu2 %v681_v53 }
 0x682   :  { %v680_v58 = vpop.xlane.xlu1 %679 }
 0x683   :  { %v684_v59 = vmul.f32 %v680_v58, %v1146_v44 }
 0x685   :  { %v686_v11 = vadd.f32 1e-05, %v684_v59 }
 0x687   :  { %937 = vrsqrt.f32 %v686_v11  ;;  %vm694_vm6 = vweird.f32 %v686_v11 }
 0x68d   :  { %v938_v60 = vpop.eup %937 }
 0x68e   :  { %v689_v61 = vmul.f32 %v938_v60, %v686_v11  ;;  %vm695_vm5 = vweird.f32 %v938_v60 }
 0x68f   :  { %vm696_vm7 = vmor %vm694_vm6, %vm695_vm5 }
 0x690   :  { %v690_v62 = vmul.f32 %v938_v60, %v689_v61 }
 0x692   :  { %v691_v1 = vmul.f32 0.5, %v690_v62 }
 0x694   :  { %v692_v3 = vsub.f32 1.5, %v691_v1  ;;  %v683_v7 = vpop.xlane.xlu2 %682 }
 0x695   :  { %v685_v8 = vmul.f32 %v683_v7, %v1146_v44  ;;  %v837_v7 = vperm.slane %v1029_v6, 6 }
 0x696   :  { %v693_v12 = vmul.f32 %v938_v60, %v692_v3 }
 0x697   :  { %v687_v14 = vadd.f32 1e-05, %v685_v8 }
 0x698   :  { %v697_v16 = vsel %vm696_vm7, %v938_v60, %v693_v12  ;;  %v840_v12 = vperm.slane %v1029_v6, 7 }
 0x699   :  { %v708_v17 = vmul.f32 %v697_v16, %v674_v46  ;;  %939 = vrsqrt.f32 %v687_v14  ;;  %vm704_vm9 = vweird.f32 %v687_v14 }
 0x69b   :  { %v711_v19 = vmul.f32 %v710_v13, %v708_v17 }
 0x69d   :  { %v714_v20 = vadd.f32 %v713_v18, %v711_v19 }
 0x69f   :  { %v940_v21 = vpop.eup %939  ;;  %877 = vmatmul.msk.f32.vlgmr.msrb.gmra.mxu0 %vm36_vm0, %v714_v20 }
 0x6a0   :  { %v699_v22 = vmul.f32 %v940_v21, %v687_v14  ;;  %vm705_vm8 = vweird.f32 %v940_v21 }
 0x6a1   :  { %vm706_vm10 = vmor %vm704_vm9, %vm705_vm8 }
 0x6a2   :  { %v700_v23 = vmul.f32 %v940_v21, %v699_v22 }
 0x6a4   :  { %v701_v24 = vmul.f32 0.5, %v700_v23 }
 0x6a6   :  { %v702_v25 = vsub.f32 1.5, %v701_v24 }
 0x6a8   :  { %v703_v26 = vmul.f32 %v940_v21, %v702_v25 }
 0x6aa   :  { %v707_v27 = vsel %vm706_vm10, %v940_v21, %v703_v26 }
 0x6ab   :  { %v709_v28 = vmul.f32 %v707_v27, %v675_v51 }
 0x6ad   :  { %v712_v29 = vmul.f32 %v710_v13, %v709_v28 }
 0x6af   :  { %v715_v30 = vadd.f32 %v713_v18, %v712_v29 }
 0x6b1   :  { %878 = vmatmul.msk.f32.gmra.mxu0 %vm36_vm0, %v715_v30 }
 0x71c   :  { %v744_v33 = vpop.f32.mrf.mxu0 }
 0x71d   :  { %v745_v34 = vadd.f32 %v744_v33, %v720_v49 }
 0x71f   :  { %v750_v35 = vmax.f32 %v745_v34, 0.0 }
 0x721   :  { %879 = vmatmul.msk.f32.vlgmr.msra.gmra.mxu3 %vm761_vm11, %v750_v35 }
 0x72e   :  { %v747_v36 = vpop.f32.mrf.mxu0 }
 0x72f   :  { %v748_v37 = vadd.f32 %v747_v36, %v720_v49 }
 0x731   :  { %v751_v38 = vmax.f32 %v748_v37, 0.0 }
 0x733   :  { %880 = vmatmul.msk.f32.gmra.mxu3 %vm761_vm11, %v751_v38 }
 0x7a4   :  { %v785_v40 = vpop.f32.mrf.mxu3 }
 0x7a5   :  { %v786_v41 = vadd.f32 %v785_v40, %v760_v39 }
 0x7a7   :  { %v791_v42 = vadd.f32 %v786_v41, %v714_v20 }
 0x7a9   :  { %v793_v43 = vsel %vm36_vm0, %v791_v42, 0.0 }
 0x7aa   :  { %794 = vadd.xlane.f32.xlu2 %v793_v43 }
 0x7b6   :  { %v788_v4 = vpop.f32.mrf.mxu3 }
 0x7b7   :  { %v789_v45 = vadd.f32 %v788_v4, %v760_v39 }
 0x7b9   :  { %v792_v46 = vadd.f32 %v789_v45, %v715_v30 }
 0x7bb   :  { %v796_v47 = vsel %vm36_vm0, %v792_v46, 0.0 }
 0x7bc   :  { %797 = vadd.xlane.f32.xlu2 %v796_v47 }
 0x81d   :  { %v795_v5 = vpop.xlane.xlu2 %794 }
 0x81e   :  { %v799_v48 = vmul.f32 %v795_v5, %v1146_v44 }
 0x820   :  { %v801_v50 = vsub.f32 %v791_v42, %v799_v48 }
 0x822   :  { %v803_v51 = vmul.f32 %v801_v50, %v801_v50 }
 0x824   :  { %v805_v52 = vsel %vm36_vm0, %v803_v51, 0.0 }
 0x825   :  { %806 = vadd.xlane.f32.xlu2 %v805_v52 }
 0x82f   :  { %v798_v53 = vpop.xlane.xlu2 %797 }
 0x830   :  { %v800_v54 = vmul.f32 %v798_v53, %v1146_v44 }
 0x832   :  { %v802_v55 = vsub.f32 %v792_v46, %v800_v54 }
 0x834   :  { %v804_v56 = vmul.f32 %v802_v55, %v802_v55 }
 0x836   :  { %v808_v57 = vsel %vm36_vm0, %v804_v56, 0.0 }
 0x837   :  { %809 = vadd.xlane.f32.xlu2 %v808_v57 }
 0x898   :  { %v807_v58 = vpop.xlane.xlu2 %806 }
 0x899   :  { %v811_v59 = vmul.f32 %v807_v58, %v1146_v44 }
 0x89b   :  { %v813_v11 = vadd.f32 1e-05, %v811_v59 }
 0x89d   :  { %941 = vrsqrt.f32 %v813_v11  ;;  %vm821_vm13 = vweird.f32 %v813_v11 }
 0x8a3   :  { %v942_v60 = vpop.eup %941 }
 0x8a4   :  { %v816_v61 = vmul.f32 %v942_v60, %v813_v11  ;;  %vm822_vm12 = vweird.f32 %v942_v60 }
 0x8a5   :  { %vm823_vm14 = vmor %vm821_vm13, %vm822_vm12 }
 0x8a6   :  { %v817_v62 = vmul.f32 %v942_v60, %v816_v61 }
 0x8a8   :  { %v818_v63 = vmul.f32 0.5, %v817_v62 }
 0x8aa   :  { %v819_v0 = vsub.f32 1.5, %v818_v63  ;;  %v810_v1 = vpop.xlane.xlu2 %809 }
 0x8ab   :  { %v812_v2 = vmul.f32 %v810_v1, %v1146_v44 }
 0x8ac   :  { %v820_v3 = vmul.f32 %v942_v60, %v819_v0 }
 0x8ad   :  { %v814_v8 = vadd.f32 1e-05, %v812_v2 }
 0x8ae   :  { %v824_v10 = vsel %vm823_vm14, %v942_v60, %v820_v3 }
 0x8af   :  { %v835_v13 = vmul.f32 %v824_v10, %v801_v50  ;;  %943 = vrsqrt.f32 %v814_v8  ;;  %vm831_vm1 = vweird.f32 %v814_v8 }
 0x8b1   :  { %v838_v14 = vmul.f32 %v837_v7, %v835_v13 }
 0x8b3   :  { %v841_v15 = vadd.f32 %v840_v12, %v838_v14 }
 0x8b5   :  { %v944_v16 = vpop.eup %943  ;;  %843 = vst.msk [vmem:[%s1221_s7] sm:$0xff] %vm36_vm0, %v841_v15 }
 0x8b6   :  { %v826_v44 = vmul.f32 %v944_v16, %v814_v8  ;;  %vm832_vm15 = vweird.f32 %v944_v16 }
 0x8b7   :  { %vm833_vm2 = vmor %vm831_vm1, %vm832_vm15 }
 0x8b8   :  { %v827_v17 = vmul.f32 %v944_v16, %v826_v44 }
 0x8ba   :  { %v828_v18 = vmul.f32 0.5, %v827_v17 }
 0x8bc   :  { %v829_v19 = vsub.f32 1.5, %v828_v18 }
 0x8be   :  { %v830_v20 = vmul.f32 %v944_v16, %v829_v19 }
 0x8c0   :  { %v834_v21 = vsel %vm833_vm2, %v944_v16, %v830_v20 }
 0x8c1   :  { %v836_v6 = vmul.f32 %v834_v21, %v802_v55 }
 0x8c3   :  { %v839_v22 = vmul.f32 %v837_v7, %v836_v6 }
 0x8c5   :  { %v842_v23 = vadd.f32 %v840_v12, %v839_v22 }
 0x8c7   :  { %844 = vst.msk [vmem:[%s1221_s7 + $0x8] sm:$0xff] %vm36_vm0, %v842_v23 }

</bundles_post_ra>
